<compile_context>
chip_gen: v7x
topology: tpu7x:2x2x1
jax: 0.10.0
libtpu: 0.0.40
codegen_flags: <defaults>
</compile_context>

<pallas_src>
import functools

import jax
import jax.numpy as jnp
from jax.experimental import pallas as pl
from jax.experimental.pallas import tpu as pltpu


def _bilstm_chunk_kernel(xpf_ref, xpb_ref, wh_ref, outf_ref, outb_ref,
                         hf_sc, cf_sc, hb_sc, cb_sc):
    """One time-chunk grid step; both directions interleaved.

    xpf_ref : (Tc, B, 4H)  fwd-direction x@Wx+b, original-time chunk ci.
    xpb_ref : (Tc, B, 4H)  bwd-direction x@Wx+b, original-time chunk NC-1-ci.
    wh_ref  : (2, H, 4H)   hidden->gate weights [fwd, bwd], gate order [i,f,g,o].
    outf_ref: (Tc, B, H)   forward hidden states, chunk ci.
    outb_ref: (Tc, B, H)   backward hidden states, chunk NC-1-ci.
    *_sc    : (B, H) f32 VMEM scratch carrying recurrent state across chunks.
    """
    ci = pl.program_id(0)

    @pl.when(ci == 0)
    def _():
        hf_sc[...] = jnp.zeros_like(hf_sc)
        cf_sc[...] = jnp.zeros_like(cf_sc)
        hb_sc[...] = jnp.zeros_like(hb_sc)
        cb_sc[...] = jnp.zeros_like(cb_sc)

    B, H = hf_sc.shape
    Tc = xpf_ref.shape[0]

    # sigmoid(x) = 0.5*tanh(x/2) + 0.5  -> one EUP (tanh) pass over all 4H
    # gate columns; tanh on the candidate-gate (g) columns, sigmoid elsewhere.
    # The per-lane scale/offset is hoisted out of the serial step loop.
    lane = jax.lax.broadcasted_iota(jnp.int32, (B, 4 * H), 1)
    is_g = (lane >= 2 * H) & (lane < 3 * H)
    scale = jnp.where(is_g, 1.0, 0.5).astype(jnp.float32)
    offset = jnp.where(is_g, 0.0, 0.5).astype(jnp.float32)

    def cell(gx, wh_view, h_prev, c_prev):
        # gates = (x_t @ Wx + b) + h_prev @ Wh   -- input part precomputed.
        gates = gx + jnp.dot(h_prev, wh_view[...],
                             preferred_element_type=jnp.float32)
        t = jnp.tanh(gates * scale)
        act = t * scale + offset
        i_t = act[:, 0 * H:1 * H]
        f_t = act[:, 1 * H:2 * H]
        g_t = act[:, 2 * H:3 * H]
        o_t = act[:, 3 * H:4 * H]
        c_t = f_t * c_prev + i_t * g_t
        h_t = o_t * jnp.tanh(c_t)
        # nn.Dropout in eval mode == identity.
        return h_t, c_t

    # Ref views; weights are read at the dot site instead of pinning the full
    # (H,4H) value live across the unrolled chunk (avoids spills at large H).
    wh_f = wh_ref.at[0]
    wh_b = wh_ref.at[1]

    h_f, c_f = hf_sc[...], cf_sc[...]
    h_b, c_b = hb_sc[...], cb_sc[...]
    # Statically unrolled; the fwd and bwd chains are independent, so their
    # per-step MXU/EUP latencies overlap on single-TensorCore parts.
    # TODO(synk): switch to lax.fori_loop(unroll=4) + pl.ds indexing if Tc is
    #             raised past ~16 at production H (code size / vreg pressure).
    for lt in range(Tc):
        h_f, c_f = cell(xpf_ref[lt], wh_f, h_f, c_f)
        h_b, c_b = cell(xpb_ref[Tc - 1 - lt], wh_b, h_b, c_b)
        outf_ref[lt] = h_f.astype(outf_ref.dtype)
        outb_ref[Tc - 1 - lt] = h_b.astype(outb_ref.dtype)
    hf_sc[...] = h_f
    cf_sc[...] = c_f
    hb_sc[...] = h_b
    cb_sc[...] = c_b


def _largest_divisor_leq(n, cap):
    best = 1
    for c in range(1, min(n, cap) + 1):
        if n % c == 0:
            best = c
    return best


@functools.partial(jax.jit, static_argnames=("hidden_size", "max_chunk"))
def bidirectional_lstm(x, wx, wh, b, *, hidden_size, max_chunk=32):
    """x: (B, T, D) f32.  wx: (2, D, 4H), wh: (2, H, 4H), b: (2, 1, 4H),
    gate order [i, f, g, o] per direction (dir 0 = forward, 1 = backward).
    Returns (B, T, 2H) f32 (forward features first, then backward)."""
    B, T, D = x.shape
    H = hidden_size
    Tc = _largest_divisor_leq(T, max_chunk)
    NC = T // Tc

    # --- Phase 1 (hoisted out of the recurrence): the input projections for
    # both directions as two large matmuls, emitted directly in the
    # time-major (T, B, 4H) layout the kernel consumes.  Only the (T,B,D) x
    # tensor is transposed, never the 4H-wide gate slabs.
    xt = jnp.transpose(x, (1, 0, 2)).reshape(T * B, D)
    xp_f = (jnp.dot(xt, wx[0], preferred_element_type=jnp.float32)
            + b[0, 0]).reshape(T, B, 4 * H)
    xp_b = (jnp.dot(xt, wx[1], preferred_element_type=jnp.float32)
            + b[1, 0]).reshape(T, B, 4 * H)

    # Advisory scheduling hints for XLA around the long-running custom call.
    flops = 2 * 2 * T * B * H * (4 * H)           # recurrent matmuls
    transcendentals = 2 * T * B * (4 * H + H)     # tanh(gates) + tanh(c)
    bytes_accessed = 4 * (2 * T * B * 4 * H + 2 * T * B * H + 2 * H * 4 * H)

    blk_bytes = 4 * (2 * 2 * Tc * B * 4 * H       # xp blocks (double-buffered)
                     + 2 * 2 * Tc * B * H         # out blocks (double-buffered)
                     + 2 * 2 * H * 4 * H          # wh
                     + 4 * B * H)                 # state scratch
    vmem_limit = int(min(48 * 1024 * 1024,
                         max(16 * 1024 * 1024, 2 * blk_bytes)))

    out_f, out_b = pl.pallas_call(
        _bilstm_chunk_kernel,
        out_shape=(jax.ShapeDtypeStruct((T, B, H), jnp.float32),
                   jax.ShapeDtypeStruct((T, B, H), jnp.float32)),
        grid_spec=pltpu.PrefetchScalarGridSpec(
            num_scalar_prefetch=0,
            grid=(NC,),
            in_specs=[
                pl.BlockSpec((Tc, B, 4 * H), lambda ci: (ci, 0, 0)),
                pl.BlockSpec((Tc, B, 4 * H), lambda ci: (NC - 1 - ci, 0, 0)),
                # TODO(synk): pipeline_mode=pl.Buffered(1) + bf16 weights at
                #             production H to respect v7x's 64 MiB VMEM.
                pl.BlockSpec((2, H, 4 * H), lambda ci: (0, 0, 0)),
            ],
            out_specs=[
                pl.BlockSpec((Tc, B, H), lambda ci: (ci, 0, 0)),
                pl.BlockSpec((Tc, B, H), lambda ci: (NC - 1 - ci, 0, 0)),
            ],
            scratch_shapes=[pltpu.VMEM((B, H), jnp.float32)] * 4,
        ),
        compiler_params=pltpu.CompilerParams(
            # Time axis carries state in scratch -> must stay "arbitrary".
            dimension_semantics=("arbitrary",),
            vmem_limit_bytes=vmem_limit,
        ),
        cost_estimate=pl.CostEstimate(flops=flops,
                                      transcendentals=transcendentals,
                                      bytes_accessed=bytes_accessed),
    )(xp_f, xp_b, wh)

    # (T, B, H) x 2 -> (B, T, 2H): forward features first, then backward.
    out = jnp.concatenate([out_f, out_b], axis=-1)
    return jnp.transpose(out, (1, 0, 2))


def _reference(x, wx, wh, b, hidden_size):
    """Pure-JAX reference matching the PyTorch forward (eval-mode dropout)."""
    B, T, D = x.shape
    H = hidden_size

    def cell(d, x_t, h, c):
        gates = x_t @ wx[d] + h @ wh[d] + b[d, 0]
        i = jax.nn.sigmoid(gates[:, 0 * H:1 * H])
        f = jax.nn.sigmoid(gates[:, 1 * H:2 * H])
        g = jnp.tanh(gates[:, 2 * H:3 * H])
        o = jax.nn.sigmoid(gates[:, 3 * H:4 * H])
        c = f * c + i * g
        h = o * jnp.tanh(c)
        return h, c

    h = jnp.zeros((B, H), jnp.float32)
    c = jnp.zeros((B, H), jnp.float32)
    fwd = []
    for t in range(T):
        h, c = cell(0, x[:, t, :], h, c)
        fwd.append(h)
    h = jnp.zeros((B, H), jnp.float32)
    c = jnp.zeros((B, H), jnp.float32)
    bwd = [None] * T
    for t in reversed(range(T)):
        h, c = cell(1, x[:, t, :], h, c)
        bwd[t] = h
    return jnp.concatenate(
        [jnp.stack(fwd, axis=1), jnp.stack(bwd, axis=1)], axis=2
    )


if __name__ == "__main__":
    B, T, D, H = 2, 16, 48, 32  # batch, seq_len, input_dim, hidden_size

    key = jax.random.PRNGKey(0)
    kx, kwx, kwh, kb = jax.random.split(key, 4)

    x = jax.random.normal(kx, (B, T, D), dtype=jnp.float32)
    # Packed gate weights per direction, gate order [i, f, c(g), o].
    # Equivalent to nn.Linear(D + H, H) weights split into input/hidden parts.
    init_scale = 1.0 / jnp.sqrt(jnp.float32(D + H))
    wx = jax.random.uniform(kwx, (2, D, 4 * H), jnp.float32,
                            -init_scale, init_scale)
    wh = jax.random.uniform(kwh, (2, H, 4 * H), jnp.float32,
                            -init_scale, init_scale)
    b = jax.random.uniform(kb, (2, 1, 4 * H), jnp.float32,
                           -init_scale, init_scale)

    # max_chunk=8 -> Tc=8, NC=2: exercises the cross-chunk state carry for
    # both directions.
    out = bidirectional_lstm(x, wx, wh, b, hidden_size=H, max_chunk=8)
    out = jax.block_until_ready(out)

    ref = _reference(x, wx, wh, b, H)
    assert out.shape == (B, T, 2 * H), out.shape
    err = float(jnp.max(jnp.abs(out - ref)))
    assert err < 2e-4, err
    print("KERNEL_OK")
</pallas_src>

<mosaic_0001>
module attributes {stable_mosaic.version = 11 : i64} {
  func.func @_bilstm_chunk_kernel(%arg0: i32, %arg1: memref<8x2x128xf32, #tpu.memory_space<vmem>>, %arg2: memref<8x2x128xf32, #tpu.memory_space<vmem>>, %arg3: memref<2x32x128xf32, #tpu.memory_space<vmem>>, %arg4: memref<8x2x32xf32, #tpu.memory_space<vmem>>, %arg5: memref<8x2x32xf32, #tpu.memory_space<vmem>>, %arg6: memref<2x32xf32, #tpu.memory_space<vmem>>, %arg7: memref<2x32xf32, #tpu.memory_space<vmem>>, %arg8: memref<2x32xf32, #tpu.memory_space<vmem>>, %arg9: memref<2x32xf32, #tpu.memory_space<vmem>>) attributes {dimension_semantics = [#tpu.dimension_semantics<arbitrary>], iteration_bounds = array<i64: 2>, scalar_prefetch = 0 : i64, scratch_operands = 4 : i64, tpu.core_type = #tpu.core_type<tc>, window_params = [{transform_indices = @transform_0, window_bounds = array<i64: 8, 2, 128>}, {transform_indices = @transform_1, window_bounds = array<i64: 8, 2, 128>}, {pipeline_mode = #tpu.pipeline_mode<synchronous>, transform_indices = @transform_2, window_bounds = array<i64: 2, 32, 128>}, {transform_indices = @transform_3, window_bounds = array<i64: 8, 2, 32>}, {transform_indices = @transform_4, window_bounds = array<i64: 8, 2, 32>}]} {
    %c0_i32 = arith.constant 0 : i32
    %0 = arith.cmpi eq, %arg0, %c0_i32 : i32
    %1 = arith.extui %0 : i1 to i32
    %c0_i32_0 = arith.constant 0 : i32
    %2 = arith.cmpi ne, %1, %c0_i32_0 : i32
    scf.if %2 {
      %cst_172 = arith.constant 0.000000e+00 : f32
      %375 = vector.broadcast %cst_172 : f32 to vector<2x32xf32>
      %c0_173 = arith.constant 0 : index
      %c0_174 = arith.constant 0 : index
      %376 = vector.load %arg6[%c0_173, %c0_174] : memref<2x32xf32, #tpu.memory_space<vmem>>, vector<2x32xf32>
      tpu.vector_store %arg6[%c0_173, %c0_174], %375 {strides = array<i32>} : memref<2x32xf32, #tpu.memory_space<vmem>>, vector<2x32xf32>,
      %cst_175 = arith.constant 0.000000e+00 : f32
      %377 = vector.broadcast %cst_175 : f32 to vector<2x32xf32>
      %c0_176 = arith.constant 0 : index
      %c0_177 = arith.constant 0 : index
      %378 = vector.load %arg7[%c0_176, %c0_177] : memref<2x32xf32, #tpu.memory_space<vmem>>, vector<2x32xf32>
      tpu.vector_store %arg7[%c0_176, %c0_177], %377 {strides = array<i32>} : memref<2x32xf32, #tpu.memory_space<vmem>>, vector<2x32xf32>,
      %cst_178 = arith.constant 0.000000e+00 : f32
      %379 = vector.broadcast %cst_178 : f32 to vector<2x32xf32>
      %c0_179 = arith.constant 0 : index
      %c0_180 = arith.constant 0 : index
      %380 = vector.load %arg8[%c0_179, %c0_180] : memref<2x32xf32, #tpu.memory_space<vmem>>, vector<2x32xf32>
      tpu.vector_store %arg8[%c0_179, %c0_180], %379 {strides = array<i32>} : memref<2x32xf32, #tpu.memory_space<vmem>>, vector<2x32xf32>,
      %cst_181 = arith.constant 0.000000e+00 : f32
      %381 = vector.broadcast %cst_181 : f32 to vector<2x32xf32>
      %c0_182 = arith.constant 0 : index
      %c0_183 = arith.constant 0 : index
      %382 = vector.load %arg9[%c0_182, %c0_183] : memref<2x32xf32, #tpu.memory_space<vmem>>, vector<2x32xf32>
      tpu.vector_store %arg9[%c0_182, %c0_183], %381 {strides = array<i32>} : memref<2x32xf32, #tpu.memory_space<vmem>>, vector<2x32xf32>,
    } else {
    }
    %3 = tpu.iota {dimensions = array<i32: 1>} : vector<2x128xi32>
    %c64_i32 = arith.constant 64 : i32
    %4 = vector.broadcast %c64_i32 : i32 to vector<2x128xi32>
    %5 = arith.cmpi sge, %3, %4 : vector<2x128xi32>
    %c96_i32 = arith.constant 96 : i32
    %6 = vector.broadcast %c96_i32 : i32 to vector<2x128xi32>
    %7 = arith.cmpi slt, %3, %6 : vector<2x128xi32>
    %8 = arith.andi %5, %7 : vector<2x128xi1>
    %cst = arith.constant 1.000000e+00 : f32
    %cst_1 = arith.constant 5.000000e-01 : f32
    %9 = vector.broadcast %cst : f32 to vector<2x128xf32>
    %10 = vector.broadcast %cst_1 : f32 to vector<2x128xf32>
    %11 = arith.select %8, %9, %10 : vector<2x128xi1>, vector<2x128xf32>
    %cst_2 = arith.constant 0.000000e+00 : f32
    %cst_3 = arith.constant 5.000000e-01 : f32
    %12 = vector.broadcast %cst_2 : f32 to vector<2x128xf32>
    %13 = vector.broadcast %cst_3 : f32 to vector<2x128xf32>
    %14 = arith.select %8, %12, %13 : vector<2x128xi1>, vector<2x128xf32>
    %c0 = arith.constant 0 : index
    %c0_4 = arith.constant 0 : index
    %15 = vector.load %arg6[%c0, %c0_4] : memref<2x32xf32, #tpu.memory_space<vmem>>, vector<2x32xf32>
    %c0_5 = arith.constant 0 : index
    %c0_6 = arith.constant 0 : index
    %16 = vector.load %arg7[%c0_5, %c0_6] : memref<2x32xf32, #tpu.memory_space<vmem>>, vector<2x32xf32>
    %c0_7 = arith.constant 0 : index
    %c0_8 = arith.constant 0 : index
    %17 = vector.load %arg8[%c0_7, %c0_8] : memref<2x32xf32, #tpu.memory_space<vmem>>, vector<2x32xf32>
    %c0_9 = arith.constant 0 : index
    %c0_10 = arith.constant 0 : index
    %18 = vector.load %arg9[%c0_9, %c0_10] : memref<2x32xf32, #tpu.memory_space<vmem>>, vector<2x32xf32>
    %c0_11 = arith.constant 0 : index
    %c0_12 = arith.constant 0 : index
    %c0_13 = arith.constant 0 : index
    %19 = vector.load %arg1[%c0_11, %c0_12, %c0_13] : memref<8x2x128xf32, #tpu.memory_space<vmem>>, vector<1x2x128xf32>
    %20 = vector.shape_cast %19 : vector<1x2x128xf32> to vector<2x128xf32>
    %c0_14 = arith.constant 0 : index
    %c0_15 = arith.constant 0 : index
    %c0_16 = arith.constant 0 : index
    %21 = vector.load %arg3[%c0_14, %c0_15, %c0_16] : memref<2x32x128xf32, #tpu.memory_space<vmem>>, vector<1x32x128xf32>
    %22 = vector.shape_cast %21 : vector<1x32x128xf32> to vector<32x128xf32>
    %cst_17 = arith.constant dense<0.000000e+00> : vector<2x128xf32>
    %23 = tpu.matmul %15, %22, %cst_17 {dimension_numbers = #tpu.dot_dimension_numbers<[1], [0], [0], [1], [0, 0, 1, 1], [], []>} : vector<2x32xf32>, vector<32x128xf32>, vector<2x128xf32> -> vector<2x128xf32>
    %24 = arith.addf %20, %23 : vector<2x128xf32>
    %25 = arith.mulf %24, %11 : vector<2x128xf32>
    %26 = math.tanh %25 : vector<2x128xf32>
    %27 = arith.mulf %26, %11 : vector<2x128xf32>
    %28 = arith.addf %27, %14 : vector<2x128xf32>
    %29 = vector.extract_strided_slice %28 {offsets = [0, 0], sizes = [2, 32], strides = [1, 1]} : vector<2x128xf32> to vector<2x32xf32>
    %30 = vector.extract_strided_slice %28 {offsets = [0, 32], sizes = [2, 32], strides = [1, 1]} : vector<2x128xf32> to vector<2x32xf32>
    %31 = vector.extract_strided_slice %28 {offsets = [0, 64], sizes = [2, 32], strides = [1, 1]} : vector<2x128xf32> to vector<2x32xf32>
    %32 = vector.extract_strided_slice %28 {offsets = [0, 96], sizes = [2, 32], strides = [1, 1]} : vector<2x128xf32> to vector<2x32xf32>
    %33 = arith.mulf %30, %16 : vector<2x32xf32>
    %34 = arith.mulf %29, %31 : vector<2x32xf32>
    %35 = arith.addf %33, %34 : vector<2x32xf32>
    %36 = math.tanh %35 : vector<2x32xf32>
    %37 = arith.mulf %32, %36 : vector<2x32xf32>
    %c7 = arith.constant 7 : index
    %c0_18 = arith.constant 0 : index
    %c0_19 = arith.constant 0 : index
    %38 = vector.load %arg2[%c7, %c0_18, %c0_19] : memref<8x2x128xf32, #tpu.memory_space<vmem>>, vector<1x2x128xf32>
    %39 = vector.shape_cast %38 : vector<1x2x128xf32> to vector<2x128xf32>
    %c1 = arith.constant 1 : index
    %c0_20 = arith.constant 0 : index
    %c0_21 = arith.constant 0 : index
    %40 = vector.load %arg3[%c1, %c0_20, %c0_21] : memref<2x32x128xf32, #tpu.memory_space<vmem>>, vector<1x32x128xf32>
    %41 = vector.shape_cast %40 : vector<1x32x128xf32> to vector<32x128xf32>
    %cst_22 = arith.constant dense<0.000000e+00> : vector<2x128xf32>
    %42 = tpu.matmul %17, %41, %cst_22 {dimension_numbers = #tpu.dot_dimension_numbers<[1], [0], [0], [1], [0, 0, 1, 1], [], []>} : vector<2x32xf32>, vector<32x128xf32>, vector<2x128xf32> -> vector<2x128xf32>
    %43 = arith.addf %39, %42 : vector<2x128xf32>
    %44 = arith.mulf %43, %11 : vector<2x128xf32>
    %45 = math.tanh %44 : vector<2x128xf32>
    %46 = arith.mulf %45, %11 : vector<2x128xf32>
    %47 = arith.addf %46, %14 : vector<2x128xf32>
    %48 = vector.extract_strided_slice %47 {offsets = [0, 0], sizes = [2, 32], strides = [1, 1]} : vector<2x128xf32> to vector<2x32xf32>
    %49 = vector.extract_strided_slice %47 {offsets = [0, 32], sizes = [2, 32], strides = [1, 1]} : vector<2x128xf32> to vector<2x32xf32>
    %50 = vector.extract_strided_slice %47 {offsets = [0, 64], sizes = [2, 32], strides = [1, 1]} : vector<2x128xf32> to vector<2x32xf32>
    %51 = vector.extract_strided_slice %47 {offsets = [0, 96], sizes = [2, 32], strides = [1, 1]} : vector<2x128xf32> to vector<2x32xf32>
    %52 = arith.mulf %49, %18 : vector<2x32xf32>
    %53 = arith.mulf %48, %50 : vector<2x32xf32>
    %54 = arith.addf %52, %53 : vector<2x32xf32>
    %55 = math.tanh %54 : vector<2x32xf32>
    %56 = arith.mulf %51, %55 : vector<2x32xf32>
    %c0_23 = arith.constant 0 : index
    %c0_24 = arith.constant 0 : index
    %c0_25 = arith.constant 0 : index
    %57 = vector.load %arg4[%c0_23, %c0_24, %c0_25] : memref<8x2x32xf32, #tpu.memory_space<vmem>>, vector<1x2x32xf32>
    %58 = vector.shape_cast %57 : vector<1x2x32xf32> to vector<2x32xf32>
    %59 = vector.shape_cast %37 : vector<2x32xf32> to vector<1x2x32xf32>
    tpu.vector_store %arg4[%c0_23, %c0_24, %c0_25], %59 {strides = array<i32>} : memref<8x2x32xf32, #tpu.memory_space<vmem>>, vector<1x2x32xf32>,
    %c7_26 = arith.constant 7 : index
    %c0_27 = arith.constant 0 : index
    %c0_28 = arith.constant 0 : index
    %60 = vector.load %arg5[%c7_26, %c0_27, %c0_28] : memref<8x2x32xf32, #tpu.memory_space<vmem>>, vector<1x2x32xf32>
    %61 = vector.shape_cast %60 : vector<1x2x32xf32> to vector<2x32xf32>
    %62 = vector.shape_cast %56 : vector<2x32xf32> to vector<1x2x32xf32>
    tpu.vector_store %arg5[%c7_26, %c0_27, %c0_28], %62 {strides = array<i32>} : memref<8x2x32xf32, #tpu.memory_space<vmem>>, vector<1x2x32xf32>,
    %c1_29 = arith.constant 1 : index
    %c0_30 = arith.constant 0 : index
    %c0_31 = arith.constant 0 : index
    %63 = vector.load %arg1[%c1_29, %c0_30, %c0_31] : memref<8x2x128xf32, #tpu.memory_space<vmem>>, vector<1x2x128xf32>
    %64 = vector.shape_cast %63 : vector<1x2x128xf32> to vector<2x128xf32>
    %c0_32 = arith.constant 0 : index
    %c0_33 = arith.constant 0 : index
    %c0_34 = arith.constant 0 : index
    %65 = vector.load %arg3[%c0_32, %c0_33, %c0_34] : memref<2x32x128xf32, #tpu.memory_space<vmem>>, vector<1x32x128xf32>
    %66 = vector.shape_cast %65 : vector<1x32x128xf32> to vector<32x128xf32>
    %cst_35 = arith.constant dense<0.000000e+00> : vector<2x128xf32>
    %67 = tpu.matmul %37, %66, %cst_35 {dimension_numbers = #tpu.dot_dimension_numbers<[1], [0], [0], [1], [0, 0, 1, 1], [], []>} : vector<2x32xf32>, vector<32x128xf32>, vector<2x128xf32> -> vector<2x128xf32>
    %68 = arith.addf %64, %67 : vector<2x128xf32>
    %69 = arith.mulf %68, %11 : vector<2x128xf32>
    %70 = math.tanh %69 : vector<2x128xf32>
    %71 = arith.mulf %70, %11 : vector<2x128xf32>
    %72 = arith.addf %71, %14 : vector<2x128xf32>
    %73 = vector.extract_strided_slice %72 {offsets = [0, 0], sizes = [2, 32], strides = [1, 1]} : vector<2x128xf32> to vector<2x32xf32>
    %74 = vector.extract_strided_slice %72 {offsets = [0, 32], sizes = [2, 32], strides = [1, 1]} : vector<2x128xf32> to vector<2x32xf32>
    %75 = vector.extract_strided_slice %72 {offsets = [0, 64], sizes = [2, 32], strides = [1, 1]} : vector<2x128xf32> to vector<2x32xf32>
    %76 = vector.extract_strided_slice %72 {offsets = [0, 96], sizes = [2, 32], strides = [1, 1]} : vector<2x128xf32> to vector<2x32xf32>
    %77 = arith.mulf %74, %35 : vector<2x32xf32>
    %78 = arith.mulf %73, %75 : vector<2x32xf32>
    %79 = arith.addf %77, %78 : vector<2x32xf32>
    %80 = math.tanh %79 : vector<2x32xf32>
    %81 = arith.mulf %76, %80 : vector<2x32xf32>
    %c6 = arith.constant 6 : index
    %c0_36 = arith.constant 0 : index
    %c0_37 = arith.constant 0 : index
    %82 = vector.load %arg2[%c6, %c0_36, %c0_37] : memref<8x2x128xf32, #tpu.memory_space<vmem>>, vector<1x2x128xf32>
    %83 = vector.shape_cast %82 : vector<1x2x128xf32> to vector<2x128xf32>
    %c1_38 = arith.constant 1 : index
    %c0_39 = arith.constant 0 : index
    %c0_40 = arith.constant 0 : index
    %84 = vector.load %arg3[%c1_38, %c0_39, %c0_40] : memref<2x32x128xf32, #tpu.memory_space<vmem>>, vector<1x32x128xf32>
    %85 = vector.shape_cast %84 : vector<1x32x128xf32> to vector<32x128xf32>
    %cst_41 = arith.constant dense<0.000000e+00> : vector<2x128xf32>
    %86 = tpu.matmul %56, %85, %cst_41 {dimension_numbers = #tpu.dot_dimension_numbers<[1], [0], [0], [1], [0, 0, 1, 1], [], []>} : vector<2x32xf32>, vector<32x128xf32>, vector<2x128xf32> -> vector<2x128xf32>
    %87 = arith.addf %83, %86 : vector<2x128xf32>
    %88 = arith.mulf %87, %11 : vector<2x128xf32>
    %89 = math.tanh %88 : vector<2x128xf32>
    %90 = arith.mulf %89, %11 : vector<2x128xf32>
    %91 = arith.addf %90, %14 : vector<2x128xf32>
    %92 = vector.extract_strided_slice %91 {offsets = [0, 0], sizes = [2, 32], strides = [1, 1]} : vector<2x128xf32> to vector<2x32xf32>
    %93 = vector.extract_strided_slice %91 {offsets = [0, 32], sizes = [2, 32], strides = [1, 1]} : vector<2x128xf32> to vector<2x32xf32>
    %94 = vector.extract_strided_slice %91 {offsets = [0, 64], sizes = [2, 32], strides = [1, 1]} : vector<2x128xf32> to vector<2x32xf32>
    %95 = vector.extract_strided_slice %91 {offsets = [0, 96], sizes = [2, 32], strides = [1, 1]} : vector<2x128xf32> to vector<2x32xf32>
    %96 = arith.mulf %93, %54 : vector<2x32xf32>
    %97 = arith.mulf %92, %94 : vector<2x32xf32>
    %98 = arith.addf %96, %97 : vector<2x32xf32>
    %99 = math.tanh %98 : vector<2x32xf32>
    %100 = arith.mulf %95, %99 : vector<2x32xf32>
    %c1_42 = arith.constant 1 : index
    %c0_43 = arith.constant 0 : index
    %c0_44 = arith.constant 0 : index
    %101 = vector.load %arg4[%c1_42, %c0_43, %c0_44] : memref<8x2x32xf32, #tpu.memory_space<vmem>>, vector<1x2x32xf32>
    %102 = vector.shape_cast %101 : vector<1x2x32xf32> to vector<2x32xf32>
    %103 = vector.shape_cast %81 : vector<2x32xf32> to vector<1x2x32xf32>
    tpu.vector_store %arg4[%c1_42, %c0_43, %c0_44], %103 {strides = array<i32>} : memref<8x2x32xf32, #tpu.memory_space<vmem>>, vector<1x2x32xf32>,
    %c6_45 = arith.constant 6 : index
    %c0_46 = arith.constant 0 : index
    %c0_47 = arith.constant 0 : index
    %104 = vector.load %arg5[%c6_45, %c0_46, %c0_47] : memref<8x2x32xf32, #tpu.memory_space<vmem>>, vector<1x2x32xf32>
    %105 = vector.shape_cast %104 : vector<1x2x32xf32> to vector<2x32xf32>
    %106 = vector.shape_cast %100 : vector<2x32xf32> to vector<1x2x32xf32>
    tpu.vector_store %arg5[%c6_45, %c0_46, %c0_47], %106 {strides = array<i32>} : memref<8x2x32xf32, #tpu.memory_space<vmem>>, vector<1x2x32xf32>,
    %c2 = arith.constant 2 : index
    %c0_48 = arith.constant 0 : index
    %c0_49 = arith.constant 0 : index
    %107 = vector.load %arg1[%c2, %c0_48, %c0_49] : memref<8x2x128xf32, #tpu.memory_space<vmem>>, vector<1x2x128xf32>
    %108 = vector.shape_cast %107 : vector<1x2x128xf32> to vector<2x128xf32>
    %c0_50 = arith.constant 0 : index
    %c0_51 = arith.constant 0 : index
    %c0_52 = arith.constant 0 : index
    %109 = vector.load %arg3[%c0_50, %c0_51, %c0_52] : memref<2x32x128xf32, #tpu.memory_space<vmem>>, vector<1x32x128xf32>
    %110 = vector.shape_cast %109 : vector<1x32x128xf32> to vector<32x128xf32>
    %cst_53 = arith.constant dense<0.000000e+00> : vector<2x128xf32>
    %111 = tpu.matmul %81, %110, %cst_53 {dimension_numbers = #tpu.dot_dimension_numbers<[1], [0], [0], [1], [0, 0, 1, 1], [], []>} : vector<2x32xf32>, vector<32x128xf32>, vector<2x128xf32> -> vector<2x128xf32>
    %112 = arith.addf %108, %111 : vector<2x128xf32>
    %113 = arith.mulf %112, %11 : vector<2x128xf32>
    %114 = math.tanh %113 : vector<2x128xf32>
    %115 = arith.mulf %114, %11 : vector<2x128xf32>
    %116 = arith.addf %115, %14 : vector<2x128xf32>
    %117 = vector.extract_strided_slice %116 {offsets = [0, 0], sizes = [2, 32], strides = [1, 1]} : vector<2x128xf32> to vector<2x32xf32>
    %118 = vector.extract_strided_slice %116 {offsets = [0, 32], sizes = [2, 32], strides = [1, 1]} : vector<2x128xf32> to vector<2x32xf32>
    %119 = vector.extract_strided_slice %116 {offsets = [0, 64], sizes = [2, 32], strides = [1, 1]} : vector<2x128xf32> to vector<2x32xf32>
    %120 = vector.extract_strided_slice %116 {offsets = [0, 96], sizes = [2, 32], strides = [1, 1]} : vector<2x128xf32> to vector<2x32xf32>
    %121 = arith.mulf %118, %79 : vector<2x32xf32>
    %122 = arith.mulf %117, %119 : vector<2x32xf32>
    %123 = arith.addf %121, %122 : vector<2x32xf32>
    %124 = math.tanh %123 : vector<2x32xf32>
    %125 = arith.mulf %120, %124 : vector<2x32xf32>
    %c5 = arith.constant 5 : index
    %c0_54 = arith.constant 0 : index
    %c0_55 = arith.constant 0 : index
    %126 = vector.load %arg2[%c5, %c0_54, %c0_55] : memref<8x2x128xf32, #tpu.memory_space<vmem>>, vector<1x2x128xf32>
    %127 = vector.shape_cast %126 : vector<1x2x128xf32> to vector<2x128xf32>
    %c1_56 = arith.constant 1 : index
    %c0_57 = arith.constant 0 : index
    %c0_58 = arith.constant 0 : index
    %128 = vector.load %arg3[%c1_56, %c0_57, %c0_58] : memref<2x32x128xf32, #tpu.memory_space<vmem>>, vector<1x32x128xf32>
    %129 = vector.shape_cast %128 : vector<1x32x128xf32> to vector<32x128xf32>
    %cst_59 = arith.constant dense<0.000000e+00> : vector<2x128xf32>
    %130 = tpu.matmul %100, %129, %cst_59 {dimension_numbers = #tpu.dot_dimension_numbers<[1], [0], [0], [1], [0, 0, 1, 1], [], []>} : vector<2x32xf32>, vector<32x128xf32>, vector<2x128xf32> -> vector<2x128xf32>
    %131 = arith.addf %127, %130 : vector<2x128xf32>
    %132 = arith.mulf %131, %11 : vector<2x128xf32>
    %133 = math.tanh %132 : vector<2x128xf32>
    %134 = arith.mulf %133, %11 : vector<2x128xf32>
    %135 = arith.addf %134, %14 : vector<2x128xf32>
    %136 = vector.extract_strided_slice %135 {offsets = [0, 0], sizes = [2, 32], strides = [1, 1]} : vector<2x128xf32> to vector<2x32xf32>
    %137 = vector.extract_strided_slice %135 {offsets = [0, 32], sizes = [2, 32], strides = [1, 1]} : vector<2x128xf32> to vector<2x32xf32>
    %138 = vector.extract_strided_slice %135 {offsets = [0, 64], sizes = [2, 32], strides = [1, 1]} : vector<2x128xf32> to vector<2x32xf32>
    %139 = vector.extract_strided_slice %135 {offsets = [0, 96], sizes = [2, 32], strides = [1, 1]} : vector<2x128xf32> to vector<2x32xf32>
    %140 = arith.mulf %137, %98 : vector<2x32xf32>
    %141 = arith.mulf %136, %138 : vector<2x32xf32>
    %142 = arith.addf %140, %141 : vector<2x32xf32>
    %143 = math.tanh %142 : vector<2x32xf32>
    %144 = arith.mulf %139, %143 : vector<2x32xf32>
    %c2_60 = arith.constant 2 : index
    %c0_61 = arith.constant 0 : index
    %c0_62 = arith.constant 0 : index
    %145 = vector.load %arg4[%c2_60, %c0_61, %c0_62] : memref<8x2x32xf32, #tpu.memory_space<vmem>>, vector<1x2x32xf32>
    %146 = vector.shape_cast %145 : vector<1x2x32xf32> to vector<2x32xf32>
    %147 = vector.shape_cast %125 : vector<2x32xf32> to vector<1x2x32xf32>
    tpu.vector_store %arg4[%c2_60, %c0_61, %c0_62], %147 {strides = array<i32>} : memref<8x2x32xf32, #tpu.memory_space<vmem>>, vector<1x2x32xf32>,
    %c5_63 = arith.constant 5 : index
    %c0_64 = arith.constant 0 : index
    %c0_65 = arith.constant 0 : index
    %148 = vector.load %arg5[%c5_63, %c0_64, %c0_65] : memref<8x2x32xf32, #tpu.memory_space<vmem>>, vector<1x2x32xf32>
    %149 = vector.shape_cast %148 : vector<1x2x32xf32> to vector<2x32xf32>
    %150 = vector.shape_cast %144 : vector<2x32xf32> to vector<1x2x32xf32>
    tpu.vector_store %arg5[%c5_63, %c0_64, %c0_65], %150 {strides = array<i32>} : memref<8x2x32xf32, #tpu.memory_space<vmem>>, vector<1x2x32xf32>,
    %c3 = arith.constant 3 : index
    %c0_66 = arith.constant 0 : index
    %c0_67 = arith.constant 0 : index
    %151 = vector.load %arg1[%c3, %c0_66, %c0_67] : memref<8x2x128xf32, #tpu.memory_space<vmem>>, vector<1x2x128xf32>
    %152 = vector.shape_cast %151 : vector<1x2x128xf32> to vector<2x128xf32>
    %c0_68 = arith.constant 0 : index
    %c0_69 = arith.constant 0 : index
    %c0_70 = arith.constant 0 : index
    %153 = vector.load %arg3[%c0_68, %c0_69, %c0_70] : memref<2x32x128xf32, #tpu.memory_space<vmem>>, vector<1x32x128xf32>
    %154 = vector.shape_cast %153 : vector<1x32x128xf32> to vector<32x128xf32>
    %cst_71 = arith.constant dense<0.000000e+00> : vector<2x128xf32>
    %155 = tpu.matmul %125, %154, %cst_71 {dimension_numbers = #tpu.dot_dimension_numbers<[1], [0], [0], [1], [0, 0, 1, 1], [], []>} : vector<2x32xf32>, vector<32x128xf32>, vector<2x128xf32> -> vector<2x128xf32>
    %156 = arith.addf %152, %155 : vector<2x128xf32>
    %157 = arith.mulf %156, %11 : vector<2x128xf32>
    %158 = math.tanh %157 : vector<2x128xf32>
    %159 = arith.mulf %158, %11 : vector<2x128xf32>
    %160 = arith.addf %159, %14 : vector<2x128xf32>
    %161 = vector.extract_strided_slice %160 {offsets = [0, 0], sizes = [2, 32], strides = [1, 1]} : vector<2x128xf32> to vector<2x32xf32>
    %162 = vector.extract_strided_slice %160 {offsets = [0, 32], sizes = [2, 32], strides = [1, 1]} : vector<2x128xf32> to vector<2x32xf32>
    %163 = vector.extract_strided_slice %160 {offsets = [0, 64], sizes = [2, 32], strides = [1, 1]} : vector<2x128xf32> to vector<2x32xf32>
    %164 = vector.extract_strided_slice %160 {offsets = [0, 96], sizes = [2, 32], strides = [1, 1]} : vector<2x128xf32> to vector<2x32xf32>
    %165 = arith.mulf %162, %123 : vector<2x32xf32>
    %166 = arith.mulf %161, %163 : vector<2x32xf32>
    %167 = arith.addf %165, %166 : vector<2x32xf32>
    %168 = math.tanh %167 : vector<2x32xf32>
    %169 = arith.mulf %164, %168 : vector<2x32xf32>
    %c4 = arith.constant 4 : index
    %c0_72 = arith.constant 0 : index
    %c0_73 = arith.constant 0 : index
    %170 = vector.load %arg2[%c4, %c0_72, %c0_73] : memref<8x2x128xf32, #tpu.memory_space<vmem>>, vector<1x2x128xf32>
    %171 = vector.shape_cast %170 : vector<1x2x128xf32> to vector<2x128xf32>
    %c1_74 = arith.constant 1 : index
    %c0_75 = arith.constant 0 : index
    %c0_76 = arith.constant 0 : index
    %172 = vector.load %arg3[%c1_74, %c0_75, %c0_76] : memref<2x32x128xf32, #tpu.memory_space<vmem>>, vector<1x32x128xf32>
    %173 = vector.shape_cast %172 : vector<1x32x128xf32> to vector<32x128xf32>
    %cst_77 = arith.constant dense<0.000000e+00> : vector<2x128xf32>
    %174 = tpu.matmul %144, %173, %cst_77 {dimension_numbers = #tpu.dot_dimension_numbers<[1], [0], [0], [1], [0, 0, 1, 1], [], []>} : vector<2x32xf32>, vector<32x128xf32>, vector<2x128xf32> -> vector<2x128xf32>
    %175 = arith.addf %171, %174 : vector<2x128xf32>
    %176 = arith.mulf %175, %11 : vector<2x128xf32>
    %177 = math.tanh %176 : vector<2x128xf32>
    %178 = arith.mulf %177, %11 : vector<2x128xf32>
    %179 = arith.addf %178, %14 : vector<2x128xf32>
    %180 = vector.extract_strided_slice %179 {offsets = [0, 0], sizes = [2, 32], strides = [1, 1]} : vector<2x128xf32> to vector<2x32xf32>
    %181 = vector.extract_strided_slice %179 {offsets = [0, 32], sizes = [2, 32], strides = [1, 1]} : vector<2x128xf32> to vector<2x32xf32>
    %182 = vector.extract_strided_slice %179 {offsets = [0, 64], sizes = [2, 32], strides = [1, 1]} : vector<2x128xf32> to vector<2x32xf32>
    %183 = vector.extract_strided_slice %179 {offsets = [0, 96], sizes = [2, 32], strides = [1, 1]} : vector<2x128xf32> to vector<2x32xf32>
    %184 = arith.mulf %181, %142 : vector<2x32xf32>
    %185 = arith.mulf %180, %182 : vector<2x32xf32>
    %186 = arith.addf %184, %185 : vector<2x32xf32>
    %187 = math.tanh %186 : vector<2x32xf32>
    %188 = arith.mulf %183, %187 : vector<2x32xf32>
    %c3_78 = arith.constant 3 : index
    %c0_79 = arith.constant 0 : index
    %c0_80 = arith.constant 0 : index
    %189 = vector.load %arg4[%c3_78, %c0_79, %c0_80] : memref<8x2x32xf32, #tpu.memory_space<vmem>>, vector<1x2x32xf32>
    %190 = vector.shape_cast %189 : vector<1x2x32xf32> to vector<2x32xf32>
    %191 = vector.shape_cast %169 : vector<2x32xf32> to vector<1x2x32xf32>
    tpu.vector_store %arg4[%c3_78, %c0_79, %c0_80], %191 {strides = array<i32>} : memref<8x2x32xf32, #tpu.memory_space<vmem>>, vector<1x2x32xf32>,
    %c4_81 = arith.constant 4 : index
    %c0_82 = arith.constant 0 : index
    %c0_83 = arith.constant 0 : index
    %192 = vector.load %arg5[%c4_81, %c0_82, %c0_83] : memref<8x2x32xf32, #tpu.memory_space<vmem>>, vector<1x2x32xf32>
    %193 = vector.shape_cast %192 : vector<1x2x32xf32> to vector<2x32xf32>
    %194 = vector.shape_cast %188 : vector<2x32xf32> to vector<1x2x32xf32>
    tpu.vector_store %arg5[%c4_81, %c0_82, %c0_83], %194 {strides = array<i32>} : memref<8x2x32xf32, #tpu.memory_space<vmem>>, vector<1x2x32xf32>,
    %c4_84 = arith.constant 4 : index
    %c0_85 = arith.constant 0 : index
    %c0_86 = arith.constant 0 : index
    %195 = vector.load %arg1[%c4_84, %c0_85, %c0_86] : memref<8x2x128xf32, #tpu.memory_space<vmem>>, vector<1x2x128xf32>
    %196 = vector.shape_cast %195 : vector<1x2x128xf32> to vector<2x128xf32>
    %c0_87 = arith.constant 0 : index
    %c0_88 = arith.constant 0 : index
    %c0_89 = arith.constant 0 : index
    %197 = vector.load %arg3[%c0_87, %c0_88, %c0_89] : memref<2x32x128xf32, #tpu.memory_space<vmem>>, vector<1x32x128xf32>
    %198 = vector.shape_cast %197 : vector<1x32x128xf32> to vector<32x128xf32>
    %cst_90 = arith.constant dense<0.000000e+00> : vector<2x128xf32>
    %199 = tpu.matmul %169, %198, %cst_90 {dimension_numbers = #tpu.dot_dimension_numbers<[1], [0], [0], [1], [0, 0, 1, 1], [], []>} : vector<2x32xf32>, vector<32x128xf32>, vector<2x128xf32> -> vector<2x128xf32>
    %200 = arith.addf %196, %199 : vector<2x128xf32>
    %201 = arith.mulf %200, %11 : vector<2x128xf32>
    %202 = math.tanh %201 : vector<2x128xf32>
    %203 = arith.mulf %202, %11 : vector<2x128xf32>
    %204 = arith.addf %203, %14 : vector<2x128xf32>
    %205 = vector.extract_strided_slice %204 {offsets = [0, 0], sizes = [2, 32], strides = [1, 1]} : vector<2x128xf32> to vector<2x32xf32>
    %206 = vector.extract_strided_slice %204 {offsets = [0, 32], sizes = [2, 32], strides = [1, 1]} : vector<2x128xf32> to vector<2x32xf32>
    %207 = vector.extract_strided_slice %204 {offsets = [0, 64], sizes = [2, 32], strides = [1, 1]} : vector<2x128xf32> to vector<2x32xf32>
    %208 = vector.extract_strided_slice %204 {offsets = [0, 96], sizes = [2, 32], strides = [1, 1]} : vector<2x128xf32> to vector<2x32xf32>
    %209 = arith.mulf %206, %167 : vector<2x32xf32>
    %210 = arith.mulf %205, %207 : vector<2x32xf32>
    %211 = arith.addf %209, %210 : vector<2x32xf32>
    %212 = math.tanh %211 : vector<2x32xf32>
    %213 = arith.mulf %208, %212 : vector<2x32xf32>
    %c3_91 = arith.constant 3 : index
    %c0_92 = arith.constant 0 : index
    %c0_93 = arith.constant 0 : index
    %214 = vector.load %arg2[%c3_91, %c0_92, %c0_93] : memref<8x2x128xf32, #tpu.memory_space<vmem>>, vector<1x2x128xf32>
    %215 = vector.shape_cast %214 : vector<1x2x128xf32> to vector<2x128xf32>
    %c1_94 = arith.constant 1 : index
    %c0_95 = arith.constant 0 : index
    %c0_96 = arith.constant 0 : index
    %216 = vector.load %arg3[%c1_94, %c0_95, %c0_96] : memref<2x32x128xf32, #tpu.memory_space<vmem>>, vector<1x32x128xf32>
    %217 = vector.shape_cast %216 : vector<1x32x128xf32> to vector<32x128xf32>
    %cst_97 = arith.constant dense<0.000000e+00> : vector<2x128xf32>
    %218 = tpu.matmul %188, %217, %cst_97 {dimension_numbers = #tpu.dot_dimension_numbers<[1], [0], [0], [1], [0, 0, 1, 1], [], []>} : vector<2x32xf32>, vector<32x128xf32>, vector<2x128xf32> -> vector<2x128xf32>
    %219 = arith.addf %215, %218 : vector<2x128xf32>
    %220 = arith.mulf %219, %11 : vector<2x128xf32>
    %221 = math.tanh %220 : vector<2x128xf32>
    %222 = arith.mulf %221, %11 : vector<2x128xf32>
    %223 = arith.addf %222, %14 : vector<2x128xf32>
    %224 = vector.extract_strided_slice %223 {offsets = [0, 0], sizes = [2, 32], strides = [1, 1]} : vector<2x128xf32> to vector<2x32xf32>
    %225 = vector.extract_strided_slice %223 {offsets = [0, 32], sizes = [2, 32], strides = [1, 1]} : vector<2x128xf32> to vector<2x32xf32>
    %226 = vector.extract_strided_slice %223 {offsets = [0, 64], sizes = [2, 32], strides = [1, 1]} : vector<2x128xf32> to vector<2x32xf32>
    %227 = vector.extract_strided_slice %223 {offsets = [0, 96], sizes = [2, 32], strides = [1, 1]} : vector<2x128xf32> to vector<2x32xf32>
    %228 = arith.mulf %225, %186 : vector<2x32xf32>
    %229 = arith.mulf %224, %226 : vector<2x32xf32>
    %230 = arith.addf %228, %229 : vector<2x32xf32>
    %231 = math.tanh %230 : vector<2x32xf32>
    %232 = arith.mulf %227, %231 : vector<2x32xf32>
    %c4_98 = arith.constant 4 : index
    %c0_99 = arith.constant 0 : index
    %c0_100 = arith.constant 0 : index
    %233 = vector.load %arg4[%c4_98, %c0_99, %c0_100] : memref<8x2x32xf32, #tpu.memory_space<vmem>>, vector<1x2x32xf32>
    %234 = vector.shape_cast %233 : vector<1x2x32xf32> to vector<2x32xf32>
    %235 = vector.shape_cast %213 : vector<2x32xf32> to vector<1x2x32xf32>
    tpu.vector_store %arg4[%c4_98, %c0_99, %c0_100], %235 {strides = array<i32>} : memref<8x2x32xf32, #tpu.memory_space<vmem>>, vector<1x2x32xf32>,
    %c3_101 = arith.constant 3 : index
    %c0_102 = arith.constant 0 : index
    %c0_103 = arith.constant 0 : index
    %236 = vector.load %arg5[%c3_101, %c0_102, %c0_103] : memref<8x2x32xf32, #tpu.memory_space<vmem>>, vector<1x2x32xf32>
    %237 = vector.shape_cast %236 : vector<1x2x32xf32> to vector<2x32xf32>
    %238 = vector.shape_cast %232 : vector<2x32xf32> to vector<1x2x32xf32>
    tpu.vector_store %arg5[%c3_101, %c0_102, %c0_103], %238 {strides = array<i32>} : memref<8x2x32xf32, #tpu.memory_space<vmem>>, vector<1x2x32xf32>,
    %c5_104 = arith.constant 5 : index
    %c0_105 = arith.constant 0 : index
    %c0_106 = arith.constant 0 : index
    %239 = vector.load %arg1[%c5_104, %c0_105, %c0_106] : memref<8x2x128xf32, #tpu.memory_space<vmem>>, vector<1x2x128xf32>
    %240 = vector.shape_cast %239 : vector<1x2x128xf32> to vector<2x128xf32>
    %c0_107 = arith.constant 0 : index
    %c0_108 = arith.constant 0 : index
    %c0_109 = arith.constant 0 : index
    %241 = vector.load %arg3[%c0_107, %c0_108, %c0_109] : memref<2x32x128xf32, #tpu.memory_space<vmem>>, vector<1x32x128xf32>
    %242 = vector.shape_cast %241 : vector<1x32x128xf32> to vector<32x128xf32>
    %cst_110 = arith.constant dense<0.000000e+00> : vector<2x128xf32>
    %243 = tpu.matmul %213, %242, %cst_110 {dimension_numbers = #tpu.dot_dimension_numbers<[1], [0], [0], [1], [0, 0, 1, 1], [], []>} : vector<2x32xf32>, vector<32x128xf32>, vector<2x128xf32> -> vector<2x128xf32>
    %244 = arith.addf %240, %243 : vector<2x128xf32>
    %245 = arith.mulf %244, %11 : vector<2x128xf32>
    %246 = math.tanh %245 : vector<2x128xf32>
    %247 = arith.mulf %246, %11 : vector<2x128xf32>
    %248 = arith.addf %247, %14 : vector<2x128xf32>
    %249 = vector.extract_strided_slice %248 {offsets = [0, 0], sizes = [2, 32], strides = [1, 1]} : vector<2x128xf32> to vector<2x32xf32>
    %250 = vector.extract_strided_slice %248 {offsets = [0, 32], sizes = [2, 32], strides = [1, 1]} : vector<2x128xf32> to vector<2x32xf32>
    %251 = vector.extract_strided_slice %248 {offsets = [0, 64], sizes = [2, 32], strides = [1, 1]} : vector<2x128xf32> to vector<2x32xf32>
    %252 = vector.extract_strided_slice %248 {offsets = [0, 96], sizes = [2, 32], strides = [1, 1]} : vector<2x128xf32> to vector<2x32xf32>
    %253 = arith.mulf %250, %211 : vector<2x32xf32>
    %254 = arith.mulf %249, %251 : vector<2x32xf32>
    %255 = arith.addf %253, %254 : vector<2x32xf32>
    %256 = math.tanh %255 : vector<2x32xf32>
    %257 = arith.mulf %252, %256 : vector<2x32xf32>
    %c2_111 = arith.constant 2 : index
    %c0_112 = arith.constant 0 : index
    %c0_113 = arith.constant 0 : index
    %258 = vector.load %arg2[%c2_111, %c0_112, %c0_113] : memref<8x2x128xf32, #tpu.memory_space<vmem>>, vector<1x2x128xf32>
    %259 = vector.shape_cast %258 : vector<1x2x128xf32> to vector<2x128xf32>
    %c1_114 = arith.constant 1 : index
    %c0_115 = arith.constant 0 : index
    %c0_116 = arith.constant 0 : index
    %260 = vector.load %arg3[%c1_114, %c0_115, %c0_116] : memref<2x32x128xf32, #tpu.memory_space<vmem>>, vector<1x32x128xf32>
    %261 = vector.shape_cast %260 : vector<1x32x128xf32> to vector<32x128xf32>
    %cst_117 = arith.constant dense<0.000000e+00> : vector<2x128xf32>
    %262 = tpu.matmul %232, %261, %cst_117 {dimension_numbers = #tpu.dot_dimension_numbers<[1], [0], [0], [1], [0, 0, 1, 1], [], []>} : vector<2x32xf32>, vector<32x128xf32>, vector<2x128xf32> -> vector<2x128xf32>
    %263 = arith.addf %259, %262 : vector<2x128xf32>
    %264 = arith.mulf %263, %11 : vector<2x128xf32>
    %265 = math.tanh %264 : vector<2x128xf32>
    %266 = arith.mulf %265, %11 : vector<2x128xf32>
    %267 = arith.addf %266, %14 : vector<2x128xf32>
    %268 = vector.extract_strided_slice %267 {offsets = [0, 0], sizes = [2, 32], strides = [1, 1]} : vector<2x128xf32> to vector<2x32xf32>
    %269 = vector.extract_strided_slice %267 {offsets = [0, 32], sizes = [2, 32], strides = [1, 1]} : vector<2x128xf32> to vector<2x32xf32>
    %270 = vector.extract_strided_slice %267 {offsets = [0, 64], sizes = [2, 32], strides = [1, 1]} : vector<2x128xf32> to vector<2x32xf32>
    %271 = vector.extract_strided_slice %267 {offsets = [0, 96], sizes = [2, 32], strides = [1, 1]} : vector<2x128xf32> to vector<2x32xf32>
    %272 = arith.mulf %269, %230 : vector<2x32xf32>
    %273 = arith.mulf %268, %270 : vector<2x32xf32>
    %274 = arith.addf %272, %273 : vector<2x32xf32>
    %275 = math.tanh %274 : vector<2x32xf32>
    %276 = arith.mulf %271, %275 : vector<2x32xf32>
    %c5_118 = arith.constant 5 : index
    %c0_119 = arith.constant 0 : index
    %c0_120 = arith.constant 0 : index
    %277 = vector.load %arg4[%c5_118, %c0_119, %c0_120] : memref<8x2x32xf32, #tpu.memory_space<vmem>>, vector<1x2x32xf32>
    %278 = vector.shape_cast %277 : vector<1x2x32xf32> to vector<2x32xf32>
    %279 = vector.shape_cast %257 : vector<2x32xf32> to vector<1x2x32xf32>
    tpu.vector_store %arg4[%c5_118, %c0_119, %c0_120], %279 {strides = array<i32>} : memref<8x2x32xf32, #tpu.memory_space<vmem>>, vector<1x2x32xf32>,
    %c2_121 = arith.constant 2 : index
    %c0_122 = arith.constant 0 : index
    %c0_123 = arith.constant 0 : index
    %280 = vector.load %arg5[%c2_121, %c0_122, %c0_123] : memref<8x2x32xf32, #tpu.memory_space<vmem>>, vector<1x2x32xf32>
    %281 = vector.shape_cast %280 : vector<1x2x32xf32> to vector<2x32xf32>
    %282 = vector.shape_cast %276 : vector<2x32xf32> to vector<1x2x32xf32>
    tpu.vector_store %arg5[%c2_121, %c0_122, %c0_123], %282 {strides = array<i32>} : memref<8x2x32xf32, #tpu.memory_space<vmem>>, vector<1x2x32xf32>,
    %c6_124 = arith.constant 6 : index
    %c0_125 = arith.constant 0 : index
    %c0_126 = arith.constant 0 : index
    %283 = vector.load %arg1[%c6_124, %c0_125, %c0_126] : memref<8x2x128xf32, #tpu.memory_space<vmem>>, vector<1x2x128xf32>
    %284 = vector.shape_cast %283 : vector<1x2x128xf32> to vector<2x128xf32>
    %c0_127 = arith.constant 0 : index
    %c0_128 = arith.constant 0 : index
    %c0_129 = arith.constant 0 : index
    %285 = vector.load %arg3[%c0_127, %c0_128, %c0_129] : memref<2x32x128xf32, #tpu.memory_space<vmem>>, vector<1x32x128xf32>
    %286 = vector.shape_cast %285 : vector<1x32x128xf32> to vector<32x128xf32>
    %cst_130 = arith.constant dense<0.000000e+00> : vector<2x128xf32>
    %287 = tpu.matmul %257, %286, %cst_130 {dimension_numbers = #tpu.dot_dimension_numbers<[1], [0], [0], [1], [0, 0, 1, 1], [], []>} : vector<2x32xf32>, vector<32x128xf32>, vector<2x128xf32> -> vector<2x128xf32>
    %288 = arith.addf %284, %287 : vector<2x128xf32>
    %289 = arith.mulf %288, %11 : vector<2x128xf32>
    %290 = math.tanh %289 : vector<2x128xf32>
    %291 = arith.mulf %290, %11 : vector<2x128xf32>
    %292 = arith.addf %291, %14 : vector<2x128xf32>
    %293 = vector.extract_strided_slice %292 {offsets = [0, 0], sizes = [2, 32], strides = [1, 1]} : vector<2x128xf32> to vector<2x32xf32>
    %294 = vector.extract_strided_slice %292 {offsets = [0, 32], sizes = [2, 32], strides = [1, 1]} : vector<2x128xf32> to vector<2x32xf32>
    %295 = vector.extract_strided_slice %292 {offsets = [0, 64], sizes = [2, 32], strides = [1, 1]} : vector<2x128xf32> to vector<2x32xf32>
    %296 = vector.extract_strided_slice %292 {offsets = [0, 96], sizes = [2, 32], strides = [1, 1]} : vector<2x128xf32> to vector<2x32xf32>
    %297 = arith.mulf %294, %255 : vector<2x32xf32>
    %298 = arith.mulf %293, %295 : vector<2x32xf32>
    %299 = arith.addf %297, %298 : vector<2x32xf32>
    %300 = math.tanh %299 : vector<2x32xf32>
    %301 = arith.mulf %296, %300 : vector<2x32xf32>
    %c1_131 = arith.constant 1 : index
    %c0_132 = arith.constant 0 : index
    %c0_133 = arith.constant 0 : index
    %302 = vector.load %arg2[%c1_131, %c0_132, %c0_133] : memref<8x2x128xf32, #tpu.memory_space<vmem>>, vector<1x2x128xf32>
    %303 = vector.shape_cast %302 : vector<1x2x128xf32> to vector<2x128xf32>
    %c1_134 = arith.constant 1 : index
    %c0_135 = arith.constant 0 : index
    %c0_136 = arith.constant 0 : index
    %304 = vector.load %arg3[%c1_134, %c0_135, %c0_136] : memref<2x32x128xf32, #tpu.memory_space<vmem>>, vector<1x32x128xf32>
    %305 = vector.shape_cast %304 : vector<1x32x128xf32> to vector<32x128xf32>
    %cst_137 = arith.constant dense<0.000000e+00> : vector<2x128xf32>
    %306 = tpu.matmul %276, %305, %cst_137 {dimension_numbers = #tpu.dot_dimension_numbers<[1], [0], [0], [1], [0, 0, 1, 1], [], []>} : vector<2x32xf32>, vector<32x128xf32>, vector<2x128xf32> -> vector<2x128xf32>
    %307 = arith.addf %303, %306 : vector<2x128xf32>
    %308 = arith.mulf %307, %11 : vector<2x128xf32>
    %309 = math.tanh %308 : vector<2x128xf32>
    %310 = arith.mulf %309, %11 : vector<2x128xf32>
    %311 = arith.addf %310, %14 : vector<2x128xf32>
    %312 = vector.extract_strided_slice %311 {offsets = [0, 0], sizes = [2, 32], strides = [1, 1]} : vector<2x128xf32> to vector<2x32xf32>
    %313 = vector.extract_strided_slice %311 {offsets = [0, 32], sizes = [2, 32], strides = [1, 1]} : vector<2x128xf32> to vector<2x32xf32>
    %314 = vector.extract_strided_slice %311 {offsets = [0, 64], sizes = [2, 32], strides = [1, 1]} : vector<2x128xf32> to vector<2x32xf32>
    %315 = vector.extract_strided_slice %311 {offsets = [0, 96], sizes = [2, 32], strides = [1, 1]} : vector<2x128xf32> to vector<2x32xf32>
    %316 = arith.mulf %313, %274 : vector<2x32xf32>
    %317 = arith.mulf %312, %314 : vector<2x32xf32>
    %318 = arith.addf %316, %317 : vector<2x32xf32>
    %319 = math.tanh %318 : vector<2x32xf32>
    %320 = arith.mulf %315, %319 : vector<2x32xf32>
    %c6_138 = arith.constant 6 : index
    %c0_139 = arith.constant 0 : index
    %c0_140 = arith.constant 0 : index
    %321 = vector.load %arg4[%c6_138, %c0_139, %c0_140] : memref<8x2x32xf32, #tpu.memory_space<vmem>>, vector<1x2x32xf32>
    %322 = vector.shape_cast %321 : vector<1x2x32xf32> to vector<2x32xf32>
    %323 = vector.shape_cast %301 : vector<2x32xf32> to vector<1x2x32xf32>
    tpu.vector_store %arg4[%c6_138, %c0_139, %c0_140], %323 {strides = array<i32>} : memref<8x2x32xf32, #tpu.memory_space<vmem>>, vector<1x2x32xf32>,
    %c1_141 = arith.constant 1 : index
    %c0_142 = arith.constant 0 : index
    %c0_143 = arith.constant 0 : index
    %324 = vector.load %arg5[%c1_141, %c0_142, %c0_143] : memref<8x2x32xf32, #tpu.memory_space<vmem>>, vector<1x2x32xf32>
    %325 = vector.shape_cast %324 : vector<1x2x32xf32> to vector<2x32xf32>
    %326 = vector.shape_cast %320 : vector<2x32xf32> to vector<1x2x32xf32>
    tpu.vector_store %arg5[%c1_141, %c0_142, %c0_143], %326 {strides = array<i32>} : memref<8x2x32xf32, #tpu.memory_space<vmem>>, vector<1x2x32xf32>,
    %c7_144 = arith.constant 7 : index
    %c0_145 = arith.constant 0 : index
    %c0_146 = arith.constant 0 : index
    %327 = vector.load %arg1[%c7_144, %c0_145, %c0_146] : memref<8x2x128xf32, #tpu.memory_space<vmem>>, vector<1x2x128xf32>
    %328 = vector.shape_cast %327 : vector<1x2x128xf32> to vector<2x128xf32>
    %c0_147 = arith.constant 0 : index
    %c0_148 = arith.constant 0 : index
    %c0_149 = arith.constant 0 : index
    %329 = vector.load %arg3[%c0_147, %c0_148, %c0_149] : memref<2x32x128xf32, #tpu.memory_space<vmem>>, vector<1x32x128xf32>
    %330 = vector.shape_cast %329 : vector<1x32x128xf32> to vector<32x128xf32>
    %cst_150 = arith.constant dense<0.000000e+00> : vector<2x128xf32>
    %331 = tpu.matmul %301, %330, %cst_150 {dimension_numbers = #tpu.dot_dimension_numbers<[1], [0], [0], [1], [0, 0, 1, 1], [], []>} : vector<2x32xf32>, vector<32x128xf32>, vector<2x128xf32> -> vector<2x128xf32>
    %332 = arith.addf %328, %331 : vector<2x128xf32>
    %333 = arith.mulf %332, %11 : vector<2x128xf32>
    %334 = math.tanh %333 : vector<2x128xf32>
    %335 = arith.mulf %334, %11 : vector<2x128xf32>
    %336 = arith.addf %335, %14 : vector<2x128xf32>
    %337 = vector.extract_strided_slice %336 {offsets = [0, 0], sizes = [2, 32], strides = [1, 1]} : vector<2x128xf32> to vector<2x32xf32>
    %338 = vector.extract_strided_slice %336 {offsets = [0, 32], sizes = [2, 32], strides = [1, 1]} : vector<2x128xf32> to vector<2x32xf32>
    %339 = vector.extract_strided_slice %336 {offsets = [0, 64], sizes = [2, 32], strides = [1, 1]} : vector<2x128xf32> to vector<2x32xf32>
    %340 = vector.extract_strided_slice %336 {offsets = [0, 96], sizes = [2, 32], strides = [1, 1]} : vector<2x128xf32> to vector<2x32xf32>
    %341 = arith.mulf %338, %299 : vector<2x32xf32>
    %342 = arith.mulf %337, %339 : vector<2x32xf32>
    %343 = arith.addf %341, %342 : vector<2x32xf32>
    %344 = math.tanh %343 : vector<2x32xf32>
    %345 = arith.mulf %340, %344 : vector<2x32xf32>
    %c0_151 = arith.constant 0 : index
    %c0_152 = arith.constant 0 : index
    %c0_153 = arith.constant 0 : index
    %346 = vector.load %arg2[%c0_151, %c0_152, %c0_153] : memref<8x2x128xf32, #tpu.memory_space<vmem>>, vector<1x2x128xf32>
    %347 = vector.shape_cast %346 : vector<1x2x128xf32> to vector<2x128xf32>
    %c1_154 = arith.constant 1 : index
    %c0_155 = arith.constant 0 : index
    %c0_156 = arith.constant 0 : index
    %348 = vector.load %arg3[%c1_154, %c0_155, %c0_156] : memref<2x32x128xf32, #tpu.memory_space<vmem>>, vector<1x32x128xf32>
    %349 = vector.shape_cast %348 : vector<1x32x128xf32> to vector<32x128xf32>
    %cst_157 = arith.constant dense<0.000000e+00> : vector<2x128xf32>
    %350 = tpu.matmul %320, %349, %cst_157 {dimension_numbers = #tpu.dot_dimension_numbers<[1], [0], [0], [1], [0, 0, 1, 1], [], []>} : vector<2x32xf32>, vector<32x128xf32>, vector<2x128xf32> -> vector<2x128xf32>
    %351 = arith.addf %347, %350 : vector<2x128xf32>
    %352 = arith.mulf %351, %11 : vector<2x128xf32>
    %353 = math.tanh %352 : vector<2x128xf32>
    %354 = arith.mulf %353, %11 : vector<2x128xf32>
    %355 = arith.addf %354, %14 : vector<2x128xf32>
    %356 = vector.extract_strided_slice %355 {offsets = [0, 0], sizes = [2, 32], strides = [1, 1]} : vector<2x128xf32> to vector<2x32xf32>
    %357 = vector.extract_strided_slice %355 {offsets = [0, 32], sizes = [2, 32], strides = [1, 1]} : vector<2x128xf32> to vector<2x32xf32>
    %358 = vector.extract_strided_slice %355 {offsets = [0, 64], sizes = [2, 32], strides = [1, 1]} : vector<2x128xf32> to vector<2x32xf32>
    %359 = vector.extract_strided_slice %355 {offsets = [0, 96], sizes = [2, 32], strides = [1, 1]} : vector<2x128xf32> to vector<2x32xf32>
    %360 = arith.mulf %357, %318 : vector<2x32xf32>
    %361 = arith.mulf %356, %358 : vector<2x32xf32>
    %362 = arith.addf %360, %361 : vector<2x32xf32>
    %363 = math.tanh %362 : vector<2x32xf32>
    %364 = arith.mulf %359, %363 : vector<2x32xf32>
    %c7_158 = arith.constant 7 : index
    %c0_159 = arith.constant 0 : index
    %c0_160 = arith.constant 0 : index
    %365 = vector.load %arg4[%c7_158, %c0_159, %c0_160] : memref<8x2x32xf32, #tpu.memory_space<vmem>>, vector<1x2x32xf32>
    %366 = vector.shape_cast %365 : vector<1x2x32xf32> to vector<2x32xf32>
    %367 = vector.shape_cast %345 : vector<2x32xf32> to vector<1x2x32xf32>
    tpu.vector_store %arg4[%c7_158, %c0_159, %c0_160], %367 {strides = array<i32>} : memref<8x2x32xf32, #tpu.memory_space<vmem>>, vector<1x2x32xf32>,
    %c0_161 = arith.constant 0 : index
    %c0_162 = arith.constant 0 : index
    %c0_163 = arith.constant 0 : index
    %368 = vector.load %arg5[%c0_161, %c0_162, %c0_163] : memref<8x2x32xf32, #tpu.memory_space<vmem>>, vector<1x2x32xf32>
    %369 = vector.shape_cast %368 : vector<1x2x32xf32> to vector<2x32xf32>
    %370 = vector.shape_cast %364 : vector<2x32xf32> to vector<1x2x32xf32>
    tpu.vector_store %arg5[%c0_161, %c0_162, %c0_163], %370 {strides = array<i32>} : memref<8x2x32xf32, #tpu.memory_space<vmem>>, vector<1x2x32xf32>,
    %c0_164 = arith.constant 0 : index
    %c0_165 = arith.constant 0 : index
    %371 = vector.load %arg6[%c0_164, %c0_165] : memref<2x32xf32, #tpu.memory_space<vmem>>, vector<2x32xf32>
    tpu.vector_store %arg6[%c0_164, %c0_165], %345 {strides = array<i32>} : memref<2x32xf32, #tpu.memory_space<vmem>>, vector<2x32xf32>,
    %c0_166 = arith.constant 0 : index
    %c0_167 = arith.constant 0 : index
    %372 = vector.load %arg7[%c0_166, %c0_167] : memref<2x32xf32, #tpu.memory_space<vmem>>, vector<2x32xf32>
    tpu.vector_store %arg7[%c0_166, %c0_167], %343 {strides = array<i32>} : memref<2x32xf32, #tpu.memory_space<vmem>>, vector<2x32xf32>,
    %c0_168 = arith.constant 0 : index
    %c0_169 = arith.constant 0 : index
    %373 = vector.load %arg8[%c0_168, %c0_169] : memref<2x32xf32, #tpu.memory_space<vmem>>, vector<2x32xf32>
    tpu.vector_store %arg8[%c0_168, %c0_169], %364 {strides = array<i32>} : memref<2x32xf32, #tpu.memory_space<vmem>>, vector<2x32xf32>,
    %c0_170 = arith.constant 0 : index
    %c0_171 = arith.constant 0 : index
    %374 = vector.load %arg9[%c0_170, %c0_171] : memref<2x32xf32, #tpu.memory_space<vmem>>, vector<2x32xf32>
    tpu.vector_store %arg9[%c0_170, %c0_171], %362 {strides = array<i32>} : memref<2x32xf32, #tpu.memory_space<vmem>>, vector<2x32xf32>,
    return
  }
  func.func @transform_0(%arg0: i32) -> (i32, i32, i32) {
    %c0_i32 = arith.constant 0 : i32
    %c0_i32_0 = arith.constant 0 : i32
    %c0_i32_1 = arith.constant 0 : i32
    return %arg0, %c0_i32, %c0_i32_0 : i32, i32, i32
  }
  func.func @transform_1(%arg0: i32) -> (i32, i32, i32) {
    %c1_i32 = arith.constant 1 : i32
    %0 = arith.subi %c1_i32, %arg0 : i32
    %c0_i32 = arith.constant 0 : i32
    %c0_i32_0 = arith.constant 0 : i32
    %c0_i32_1 = arith.constant 0 : i32
    return %0, %c0_i32, %c0_i32_0 : i32, i32, i32
  }
  func.func @transform_2(%arg0: i32) -> (i32, i32, i32) {
    %c0_i32 = arith.constant 0 : i32
    %c0_i32_0 = arith.constant 0 : i32
    %c0_i32_1 = arith.constant 0 : i32
    %c0_i32_2 = arith.constant 0 : i32
    return %c0_i32, %c0_i32_0, %c0_i32_1 : i32, i32, i32
  }
  func.func @transform_3(%arg0: i32) -> (i32, i32, i32) {
    %c0_i32 = arith.constant 0 : i32
    %c0_i32_0 = arith.constant 0 : i32
    %c0_i32_1 = arith.constant 0 : i32
    return %arg0, %c0_i32, %c0_i32_0 : i32, i32, i32
  }
  func.func @transform_4(%arg0: i32) -> (i32, i32, i32) {
    %c1_i32 = arith.constant 1 : i32
    %0 = arith.subi %c1_i32, %arg0 : i32
    %c0_i32 = arith.constant 0 : i32
    %c0_i32_0 = arith.constant 0 : i32
    %c0_i32_1 = arith.constant 0 : i32
    return %0, %c0_i32, %c0_i32_0 : i32, i32, i32
  }
}

</mosaic_0001>

<bundles_post_ra>
// kernel: bidirectional_lstm.1
= control target key start
LH: loop header
LB: loop body
LE: loop exit
PB: predicated region body
PF: predicated region fallthrough
CT: control target
= control target key end

     0   :  { %s2656_s15 = smov 0   ;;  %s3009_s0 = inlined_call_operand.vmem [shape: f32[16,2,128], index: 0, kind: input, shape index: {}]   ;;  %s3010_s1 = inlined_call_operand.vmem [shape: f32[16,2,128], index: 1, kind: input, shape index: {}]   ;;  %s3011_s2 = inlined_call_operand.vmem [shape: f32[2,32,128], index: 2, kind: input, shape index: {}]   ;;  %s3012_s3 = inlined_call_operand.vmem [shape: f32[16,2,32], index: 3, kind: output, shape index: {0}]   ;;  %s3013_s4 = inlined_call_operand.vmem [shape: f32[16,2,32], index: 4, kind: output, shape index: {1}]  }
   0x1 LB: > { %s2091_s16 = sadd.s32 4294967295, %s2621_s15   ;;  %p2095_p0 = scmp.ge.s32.totalorder %s2621_s15, 1  ;;  %s2621_s15 = sphi %s2656_s15, %s15_s15  }
   0x2   : > { %p183_p1 = scmp.lt.s32.totalorder %s2621_s15, 3 }
   0x4   : > { %p184_p2 = pnand %p2095_p0, %p183_p1 }
   0x5   : > { %s2096_s17 = sshll.u32 (!%p184_p2), %s2091_s16, 3  ;;  %s227_s18 = ssub.s32 (!%p184_p2), 1, %s2091_s16 }
   0x6   : > { %187 = sbr.rel (%p184_p2) target bundleno = 5707 (0x164b), region = 32  ;;  %p222_p3 = scmp.lt.s32.totalorder (!%p184_p2), %s2096_s17, 15 }
   0x7   : > { %s2098_s19 = sshll.u32 (!%p184_p2), %s227_s18, 3  ;;  %p2104_p5 = scmp.ne.s32.totalorder (!%p184_p2), %s2091_s16, 0 }
   0x8   : > { %p229_p4 = scmp.lt.s32.totalorder (!%p184_p2), %s2098_s19, 15 }
   0xd   : > { %s3017_s17 = smov (!%p222_p3, %s2096_s17), 15  ;;  %s3019_s19 = smov (!%p229_p4, %s2098_s19), 15 }
   0xe   : > { %s2097_s20 = sshll.u32 %s3017_s17, 1  ;;  %s2099_s24 = sshll.u32 %s3019_s19, 1  ;;  %vm253_vm0 = vcmask (!%p2104_p5), 254976   ;;  %v2623_v0 = vmov (!%p2104_p5), 0.0  }
   0xf   : > { %s2667_s23 = scalar_lea.vmem %s3009_s0, %s2097_s20  ;;  %s2672_s27 = scalar_lea.vmem %s3010_s1, %s2099_s24  ;;  %254 = vst.msk [vmem:[#allocation2] sm:$0x3] (!%p2104_p5), %vm253_vm0, %v2623_v0  ;;  %255 = vst.msk [vmem:[#allocation3] sm:$0x3] (!%p2104_p5), %vm253_vm0, %v2623_v0 }
  0x10   : > { %s2677_s30 = scalar_lea.vmem %s3012_s3, %s2097_s20  ;;  %s2682_s7 = scalar_lea.vmem %s3013_s4, %s2099_s24  ;;  %256 = vst.msk [vmem:[#allocation4] sm:$0x3] (!%p2104_p5), %vm253_vm0, %v2623_v0  ;;  %257 = vst.msk [vmem:[#allocation5] sm:$0x3] (!%p2104_p5), %vm253_vm0, %v2623_v0 }
  0x11   : > { %252 = sbr.rel (%p2104_p5) target bundleno = 24 (0x18), region = 36 }
  0x18 PF: > { %v270_v1 = vld [vmem:[%s3011_s2] sm:$0xff]  ;;  %v271_v2 = vld [vmem:[%s3011_s2 + $0x8] sm:$0xff]  ;;  %v2624_v4 = vmov 0.0|0.0   ;;  %v272_v7 = vld [vmem:[%s3011_s2 + $0x10] sm:$0xff]  ;;  %vm2625_vm1 = vmmov 0   ;;  %v2626_v10 = vmov 0.0   ;;  %v258_v19 = vlaneseq }
  0x19   : > { %v2107_v3 = vld [vmem:[%s3011_s2 + $0x20] sm:$0xff]  ;;  %2439 = vmatprep.subr.bf16.mxu0 %v2624_v4  ;;  %v2694_v5 = vpack.c.bf16 %v271_v2, %v270_v1  ;;  %2445 = vmatprep.subr.bf16.mxu1 %v2624_v4  ;;  %v2108_v6 = vld [vmem:[%s3011_s2 + $0x28] sm:$0xff]  ;;  %v273_v8 = vld [vmem:[%s3011_s2 + $0x18] sm:$0xff]  ;;  %s2627_s26 = smov 32   ;;  %vm274_vm2 = vcmask 261120   ;;  %v2628_v24 = vmov 0.5  }
  0x1a   : > { %v2706_v9 = vpack.c.bf16 %v2108_v6, %v2107_v3  ;;  %2271 = vmatprep.mubr.msk.f32.mxu0 %vm2625_vm1, %v2626_v10  ;;  %v2109_v11 = vld [vmem:[%s3011_s2 + $0x30] sm:$0xff]  ;;  %v2110_v12 = vld [vmem:[%s3011_s2 + $0x38] sm:$0xff]  ;;  %2282 = vmatprep.mubr.msk.f32.mxu1 %vm2625_vm1, %v2626_v10  ;;  %v2719_v13 = vpack.c.bf16 %v273_v8, %v272_v7  ;;  %v266_v14 = vld [vmem:[#allocation3] sm:$0x3]  ;;  %v259_v20 = vand.u32 127, %v258_v19  ;;  %s2629_s28 = smov 64  }
  0x1b   : > { %2441 = vmatpush3.bf16.msra.mxu0 %v2694_v5  ;;  %v2723_v15 = vpack.c.bf16 %v2110_v12, %v2109_v11  ;;  %354 = vrot.lane.b32.xlu1 %v266_v14, %s2627_s26  ;;  %v268_v16 = vld [vmem:[#allocation5] sm:$0x3]  ;;  %v265_v17 = vld [vmem:[#allocation2] sm:$0x3]  ;;  %v267_v18 = vld [vmem:[#allocation4] sm:$0x3] }
  0x1c   : > { %2442 = vmatprep.subr.bf16.mxu0 %v2624_v4  ;;  %2447 = vmatpush3.bf16.msra.mxu1 %v2706_v9  ;;  %vm260_vm3 = vcmp.ge.s32.totalorder %v259_v20, 64  ;;  %vm261_vm4 = vcmp.lt.s32.totalorder %v259_v20, 96  ;;  %v269_v22 = vld [vmem:[%s2667_s23] sm:$0x3]  ;;  %v2106_v23 = vld [vmem:[%s2672_s27 + $0xe] sm:$0x3] }
  0x1d   : > { %2448 = vmatprep.subr.bf16.mxu1 %v2624_v4  ;;  %vm2746_vm5 = vmand %vm260_vm3, %vm261_vm4  ;;  %vm484_vm6 = vcmask 254976   ;;  %v2113_v61 = vld [vmem:[%s2667_s23 + $0x2] sm:$0x3]  ;;  %v2115_v1 = vld [vmem:[%s2672_s27 + $0xc] sm:$0x3] }
  0x1e   : > { %v2754_v25 = vsel %vm2746_vm5, 1.0, %v2628_v24  ;;  %v2760_v35 = vsel %vm2746_vm5, 0.0, %v2628_v24 }
  0x1f   : > { %2444 = vmatpush3.bf16.msra.mxu0 %v2719_v13  ;;  %460 = vrot.lane.b32.xlu1 %v268_v16, %s2627_s26 }
  0x20   : > { %2450 = vmatpush3.bf16.msra.mxu1 %v2723_v15  ;;  %2451 = vmatprep.subr.bf16.mxu0 %v2624_v4 }
  0x21   : > { %2457 = vmatprep.subr.bf16.mxu1 %v2624_v4 }
  0x22   : > { %2272 = vmatmul.mubr.msk.f32.vlgmr.msra.gmra.mrb[0].mxu0 %vm274_vm2, %v265_v17 }
  0x23   : > { %2283 = vmatmul.mubr.msk.f32.vlgmr.msra.gmra.mrb[0].mxu1 %vm274_vm2, %v267_v18  ;;  %2453 = vmatpush3.bf16.msra.mxu0 %v2694_v5 }
  0x24   : > { %2454 = vmatprep.subr.bf16.mxu0 %v2624_v4  ;;  %2459 = vmatpush3.bf16.msra.mxu1 %v2706_v9 }
  0x25   : > { %2293 = vmatprep.mubr.msk.f32.mxu0 %vm2625_vm1, %v2626_v10  ;;  %2460 = vmatprep.subr.bf16.mxu1 %v2624_v4 }
  0x26   : > { %2304 = vmatprep.mubr.msk.f32.mxu1 %vm2625_vm1, %v2626_v10 }
  0x27   : > { %2456 = vmatpush3.bf16.msra.mxu0 %v2719_v13 }
  0x28   : > { %2462 = vmatpush3.bf16.msra.mxu1 %v2723_v15  ;;  %2463 = vmatprep.subr.bf16.mxu0 %v2624_v4 }
  0x29   : > { %2469 = vmatprep.subr.bf16.mxu1 %v2624_v4 }
  0x8d   : > { %v355_v45 = vpop.permute.xlu1 %354 }
  0x91   : > { %v461_v47 = vpop.permute.xlu1 %460 }
  0xf5   : > { %v344_v26 = vpop.f32.mrb[0].mxu0 }
  0xf6   : > { %v348_v27 = vadd.f32 %v344_v26, %v269_v22  ;;  %v2273_v28 = vpop.f32.mrb[1].mxu0  ;;  %v450_v29 = vpop.f32.mrb[0].mxu1 }
  0xf7   : > { %v454_v30 = vadd.f32 %v2106_v23, %v450_v29  ;;  %v2284_v31 = vpop.f32.mrb[1].mxu1 }
  0xf8   : > { %v349_v32 = vmul.f32 %v348_v27, %v2754_v25 }
  0xf9   : > { %v455_v33 = vmul.f32 %v454_v30, %v2754_v25 }
  0xfa   : > { %2551 = vtanh.f32 %v349_v32 }
  0xfb   : > { %2553 = vtanh.f32 %v455_v33 }
 0x104   : > { %v2552_v34 = vpop.eup %2551 }
 0x105   : > { %v2554_v36 = vpop.eup %2553  ;;  %v351_v37 = vmul.f32 %v2552_v34, %v2754_v25 }
 0x106   : > { %v457_v38 = vmul.f32 %v2554_v36, %v2754_v25 }
 0x107   : > { %v352_v39 = vadd.f32 %v351_v37, %v2760_v35 }
 0x108   : > { %v458_v40 = vadd.f32 %v457_v38, %v2760_v35 }
 0x109   : > { %359 = vrot.lane.b32.xlu0 %v352_v39, %s2629_s28  ;;  %v357_v46 = vmul.f32 %v355_v45, %v352_v39 }
 0x10a   : > { %v463_v50 = vmul.f32 %v461_v47, %v458_v40 }
 0x10d   : > { %465 = vrot.lane.b32.xlu0 %v458_v40, %s2629_s28 }
 0x17b   : > { %v360_v41 = vpop.permute.xlu0 %359 }
 0x17c   : > { %v362_v42 = vmul.f32 %v360_v41, %v352_v39 }
 0x17e   : > { %364 = vrot.lane.b32.xlu0 %v362_v42, %s2627_s26 }
 0x17f   : > { %v466_v43 = vpop.permute.xlu0 %465 }
 0x180   : > { %v468_v44 = vmul.f32 %v466_v43, %v458_v40  ;;  %v2125_v43 = vld [vmem:[%s2672_s27 + $0xa] sm:$0x3] }
 0x182   : > { %470 = vrot.lane.b32.xlu1 %v468_v44, %s2627_s26 }
 0x1f0   : > { %v365_v48 = vpop.permute.xlu0 %364 }
 0x1f1   : > { %v367_v49 = vadd.f32 %v365_v48, %v357_v46 }
 0x1f3   : > { %2555 = vtanh.f32 %v367_v49 }
 0x1f4   : > { %v471_v51 = vpop.permute.xlu1 %470 }
 0x1f5   : > { %v473_v52 = vadd.f32 %v471_v51, %v463_v50 }
 0x1f7   : > { %2557 = vtanh.f32 %v473_v52 }
 0x1fd   : > { %v2556_v53 = vpop.eup %2555 }
 0x1fe   : > { %370 = vrot.lane.b32.xlu0 %v2556_v53, %s2629_s28 }
 0x201   : > { %v2558_v54 = vpop.eup %2557 }
 0x202   : > { %476 = vrot.lane.b32.xlu1 %v2558_v54, %s2629_s28 }
 0x270   : > { %v371_v55 = vpop.permute.xlu0 %370 }
 0x271   : > { %v373_v56 = vmul.f32 %v371_v55, %v352_v39  ;;  %v2123_v39 = vld [vmem:[%s2667_s23 + $0x4] sm:$0x3] }
 0x273   : > { %481 = vrot.lane.b32.xlu0 %v373_v56, %s2627_s26 }
 0x274   : > { %v477_v57 = vpop.permute.xlu1 %476 }
 0x275   : > { %v479_v58 = vmul.f32 %v477_v57, %v458_v40 }
 0x277   : > { %487 = vrot.lane.b32.xlu1 %v479_v58, %s2627_s26 }
 0x2e5   : > { %v482_v59 = vpop.permute.xlu0 %481 }
 0x2e6   : > { %485 = vst.msk [vmem:[%s2677_s30] sm:$0x3] %vm484_vm6, %v482_v59  ;;  %2294 = vmatmul.mubr.msk.f32.vlgmr.msra.gmra.mrb[2].mxu0 %vm274_vm2, %v482_v59 }
 0x2e7   : > { %2465 = vmatpush3.bf16.msra.mxu0 %v2694_v5  ;;  %2315 = vmatprep.mubr.msk.f32.mxu0 %vm2625_vm1, %v2626_v10 }
 0x2e8   : > { %2466 = vmatprep.subr.bf16.mxu0 %v2624_v4 }
 0x2e9   : > { %v488_v60 = vpop.permute.xlu1 %487 }
 0x2ea   : > { %2112 = vst.msk [vmem:[%s2682_s7 + $0xe] sm:$0x3] %vm484_vm6, %v488_v60  ;;  %2305 = vmatmul.mubr.msk.f32.vlgmr.msra.gmra.mrb[2].mxu1 %vm274_vm2, %v488_v60 }
 0x2eb   : > { %2468 = vmatpush3.bf16.msra.mxu0 %v2719_v13  ;;  %2471 = vmatpush3.bf16.msra.mxu1 %v2706_v9 }
 0x2ec   : > { %2472 = vmatprep.subr.bf16.mxu1 %v2624_v4  ;;  %2326 = vmatprep.mubr.msk.f32.mxu1 %vm2625_vm1, %v2626_v10 }
 0x2ed   : > { %2475 = vmatprep.subr.bf16.mxu0 %v2624_v4 }
 0x2ef   : > { %2474 = vmatpush3.bf16.msra.mxu1 %v2723_v15 }
 0x2f0   : > { %2481 = vmatprep.subr.bf16.mxu1 %v2624_v4 }
 0x3b9   : > { %v566_v62 = vpop.f32.mrb[2].mxu0 }
 0x3ba   : > { %v570_v63 = vadd.f32 %v2113_v61, %v566_v62  ;;  %v2295_v0 = vpop.f32.mrb[3].mxu0 }
 0x3bc   : > { %v571_v2 = vmul.f32 %v570_v63, %v2754_v25 }
 0x3bd   : > { %v666_v3 = vpop.f32.mrb[2].mxu1 }
 0x3be   : > { %2559 = vtanh.f32 %v571_v2  ;;  %v670_v6 = vadd.f32 %v2115_v1, %v666_v3  ;;  %v2306_v7 = vpop.f32.mrb[3].mxu1 }
 0x3c0   : > { %v671_v8 = vmul.f32 %v670_v6, %v2754_v25 }
 0x3c2   : > { %2561 = vtanh.f32 %v671_v8 }
 0x3c8   : > { %v2560_v11 = vpop.eup %2559 }
 0x3c9   : > { %v573_v12 = vmul.f32 %v2560_v11, %v2754_v25 }
 0x3cb   : > { %v574_v14 = vadd.f32 %v573_v12, %v2760_v35 }
 0x3cc   : > { %v2562_v16 = vpop.eup %2561 }
 0x3cd   : > { %577 = vrot.lane.b32.xlu0 %v574_v14, %s2629_s28  ;;  %v673_v17 = vmul.f32 %v2562_v16, %v2754_v25  ;;  %v575_v23 = vmul.f32 %v574_v14, %v367_v49 }
 0x3cf   : > { %v674_v18 = vadd.f32 %v673_v17, %v2760_v35 }
 0x3d1   : > { %677 = vrot.lane.b32.xlu1 %v674_v18, %s2629_s28  ;;  %v675_v27 = vmul.f32 %v674_v18, %v473_v52 }
 0x43f   : > { %v578_v19 = vpop.permute.xlu0 %577 }
 0x440   : > { %v580_v20 = vmul.f32 %v578_v19, %v574_v14  ;;  %v2135_v19 = vld [vmem:[%s2672_s27 + $0x8] sm:$0x3] }
 0x442   : > { %582 = vrot.lane.b32.xlu0 %v580_v20, %s2627_s26 }
 0x443   : > { %v678_v21 = vpop.permute.xlu1 %677 }
 0x444   : > { %v680_v22 = vmul.f32 %v678_v21, %v674_v18 }
 0x446   : > { %682 = vrot.lane.b32.xlu1 %v680_v22, %s2627_s26 }
 0x4b4   : > { %v583_v24 = vpop.permute.xlu0 %582 }
 0x4b5   : > { %v585_v26 = vadd.f32 %v583_v24, %v575_v23 }
 0x4b7   : > { %2563 = vtanh.f32 %v585_v26 }
 0x4b8   : > { %v683_v28 = vpop.permute.xlu1 %682 }
 0x4b9   : > { %v685_v29 = vadd.f32 %v683_v28, %v675_v27 }
 0x4bb   : > { %2565 = vtanh.f32 %v685_v29 }
 0x4c1   : > { %v2564_v30 = vpop.eup %2563 }
 0x4c2   : > { %588 = vrot.lane.b32.xlu0 %v2564_v30, %s2629_s28 }
 0x4c5   : > { %v2566_v31 = vpop.eup %2565 }
 0x4c6   : > { %688 = vrot.lane.b32.xlu1 %v2566_v31, %s2629_s28 }
 0x534   : > { %v589_v32 = vpop.permute.xlu0 %588 }
 0x535   : > { %v591_v33 = vmul.f32 %v589_v32, %v574_v14  ;;  %v2133_v14 = vld [vmem:[%s2667_s23 + $0x6] sm:$0x3] }
 0x537   : > { %693 = vrot.lane.b32.xlu0 %v591_v33, %s2627_s26 }
 0x538   : > { %v689_v34 = vpop.permute.xlu1 %688 }
 0x539   : > { %v691_v36 = vmul.f32 %v689_v34, %v674_v18 }
 0x53b   : > { %699 = vrot.lane.b32.xlu1 %v691_v36, %s2627_s26 }
 0x5a9   : > { %v694_v37 = vpop.permute.xlu0 %693 }
 0x5aa   : > { %2121 = vst.msk [vmem:[%s2677_s30 + $0x2] sm:$0x3] %vm484_vm6, %v694_v37  ;;  %2316 = vmatmul.mubr.msk.f32.vlgmr.msra.gmra.mrb[4].mxu0 %vm274_vm2, %v694_v37 }
 0x5ab   : > { %2477 = vmatpush3.bf16.msra.mxu0 %v2694_v5  ;;  %2337 = vmatprep.mubr.msk.f32.mxu0 %vm2625_vm1, %v2626_v10 }
 0x5ac   : > { %2478 = vmatprep.subr.bf16.mxu0 %v2624_v4 }
 0x5ad   : > { %v700_v38 = vpop.permute.xlu1 %699 }
 0x5ae   : > { %2122 = vst.msk [vmem:[%s2682_s7 + $0xc] sm:$0x3] %vm484_vm6, %v700_v38  ;;  %2327 = vmatmul.mubr.msk.f32.vlgmr.msra.gmra.mrb[4].mxu1 %vm274_vm2, %v700_v38 }
 0x5af   : > { %2480 = vmatpush3.bf16.msra.mxu0 %v2719_v13  ;;  %2483 = vmatpush3.bf16.msra.mxu1 %v2706_v9 }
 0x5b0   : > { %2484 = vmatprep.subr.bf16.mxu1 %v2624_v4  ;;  %2348 = vmatprep.mubr.msk.f32.mxu1 %vm2625_vm1, %v2626_v10 }
 0x5b1   : > { %2487 = vmatprep.subr.bf16.mxu0 %v2624_v4 }
 0x5b3   : > { %2486 = vmatpush3.bf16.msra.mxu1 %v2723_v15 }
 0x5b4   : > { %2493 = vmatprep.subr.bf16.mxu1 %v2624_v4 }
 0x67d   : > { %v778_v40 = vpop.f32.mrb[4].mxu0 }
 0x67e   : > { %v782_v41 = vadd.f32 %v2123_v39, %v778_v40  ;;  %v2317_v42 = vpop.f32.mrb[5].mxu0 }
 0x680   : > { %v783_v44 = vmul.f32 %v782_v41, %v2754_v25 }
 0x681   : > { %v878_v45 = vpop.f32.mrb[4].mxu1 }
 0x682   : > { %2567 = vtanh.f32 %v783_v44  ;;  %v882_v46 = vadd.f32 %v2125_v43, %v878_v45  ;;  %v2328_v47 = vpop.f32.mrb[5].mxu1 }
 0x684   : > { %v883_v48 = vmul.f32 %v882_v46, %v2754_v25 }
 0x686   : > { %2569 = vtanh.f32 %v883_v48 }
 0x68c   : > { %v2568_v49 = vpop.eup %2567 }
 0x68d   : > { %v785_v50 = vmul.f32 %v2568_v49, %v2754_v25 }
 0x68f   : > { %v786_v51 = vadd.f32 %v785_v50, %v2760_v35 }
 0x690   : > { %v2570_v52 = vpop.eup %2569 }
 0x691   : > { %789 = vrot.lane.b32.xlu0 %v786_v51, %s2629_s28  ;;  %v885_v53 = vmul.f32 %v2570_v52, %v2754_v25  ;;  %v787_v59 = vmul.f32 %v786_v51, %v585_v26 }
 0x693   : > { %v886_v54 = vadd.f32 %v885_v53, %v2760_v35 }
 0x695   : > { %889 = vrot.lane.b32.xlu1 %v886_v54, %s2629_s28  ;;  %v887_v62 = vmul.f32 %v886_v54, %v685_v29 }
 0x703   : > { %v790_v55 = vpop.permute.xlu0 %789 }
 0x704   : > { %v792_v56 = vmul.f32 %v790_v55, %v786_v51  ;;  %v2145_v55 = vld [vmem:[%s2672_s27 + $0x6] sm:$0x3] }
 0x706   : > { %794 = vrot.lane.b32.xlu0 %v792_v56, %s2627_s26 }
 0x707   : > { %v890_v57 = vpop.permute.xlu1 %889 }
 0x708   : > { %v892_v58 = vmul.f32 %v890_v57, %v886_v54 }
 0x70a   : > { %894 = vrot.lane.b32.xlu1 %v892_v58, %s2627_s26 }
 0x778   : > { %v795_v60 = vpop.permute.xlu0 %794 }
 0x779   : > { %v797_v61 = vadd.f32 %v795_v60, %v787_v59 }
 0x77b   : > { %2571 = vtanh.f32 %v797_v61 }
 0x77c   : > { %v895_v63 = vpop.permute.xlu1 %894 }
 0x77d   : > { %v897_v0 = vadd.f32 %v895_v63, %v887_v62 }
 0x77f   : > { %2573 = vtanh.f32 %v897_v0 }
 0x785   : > { %v2572_v1 = vpop.eup %2571 }
 0x786   : > { %800 = vrot.lane.b32.xlu0 %v2572_v1, %s2629_s28 }
 0x789   : > { %v2574_v2 = vpop.eup %2573 }
 0x78a   : > { %900 = vrot.lane.b32.xlu1 %v2574_v2, %s2629_s28 }
 0x7f8   : > { %v801_v3 = vpop.permute.xlu0 %800 }
 0x7f9   : > { %v803_v6 = vmul.f32 %v801_v3, %v786_v51  ;;  %v2143_v51 = vld [vmem:[%s2667_s23 + $0x8] sm:$0x3] }
 0x7fb   : > { %905 = vrot.lane.b32.xlu0 %v803_v6, %s2627_s26 }
 0x7fc   : > { %v901_v7 = vpop.permute.xlu1 %900 }
 0x7fd   : > { %v903_v8 = vmul.f32 %v901_v7, %v886_v54 }
 0x7ff   : > { %911 = vrot.lane.b32.xlu1 %v903_v8, %s2627_s26 }
 0x86d   : > { %v906_v11 = vpop.permute.xlu0 %905 }
 0x86e   : > { %2131 = vst.msk [vmem:[%s2677_s30 + $0x4] sm:$0x3] %vm484_vm6, %v906_v11  ;;  %2338 = vmatmul.mubr.msk.f32.vlgmr.msra.gmra.mrb[6].mxu0 %vm274_vm2, %v906_v11 }
 0x86f   : > { %2489 = vmatpush3.bf16.msra.mxu0 %v2694_v5  ;;  %2359 = vmatprep.mubr.msk.f32.mxu0 %vm2625_vm1, %v2626_v10 }
 0x870   : > { %2490 = vmatprep.subr.bf16.mxu0 %v2624_v4 }
 0x871   : > { %v912_v12 = vpop.permute.xlu1 %911 }
 0x872   : > { %2132 = vst.msk [vmem:[%s2682_s7 + $0xa] sm:$0x3] %vm484_vm6, %v912_v12  ;;  %2349 = vmatmul.mubr.msk.f32.vlgmr.msra.gmra.mrb[6].mxu1 %vm274_vm2, %v912_v12 }
 0x873   : > { %2492 = vmatpush3.bf16.msra.mxu0 %v2719_v13  ;;  %2495 = vmatpush3.bf16.msra.mxu1 %v2706_v9 }
 0x874   : > { %2496 = vmatprep.subr.bf16.mxu1 %v2624_v4  ;;  %2370 = vmatprep.mubr.msk.f32.mxu1 %vm2625_vm1, %v2626_v10 }
 0x875   : > { %2499 = vmatprep.subr.bf16.mxu0 %v2624_v4 }
 0x877   : > { %2498 = vmatpush3.bf16.msra.mxu1 %v2723_v15 }
 0x878   : > { %2505 = vmatprep.subr.bf16.mxu1 %v2624_v4 }
 0x941   : > { %v990_v16 = vpop.f32.mrb[6].mxu0 }
 0x942   : > { %v994_v17 = vadd.f32 %v2133_v14, %v990_v16  ;;  %v2339_v18 = vpop.f32.mrb[7].mxu0 }
 0x944   : > { %v995_v20 = vmul.f32 %v994_v17, %v2754_v25 }
 0x945   : > { %v1090_v21 = vpop.f32.mrb[6].mxu1 }
 0x946   : > { %2575 = vtanh.f32 %v995_v20  ;;  %v1094_v22 = vadd.f32 %v2135_v19, %v1090_v21  ;;  %v2350_v23 = vpop.f32.mrb[7].mxu1 }
 0x948   : > { %v1095_v24 = vmul.f32 %v1094_v22, %v2754_v25 }
 0x94a   : > { %2577 = vtanh.f32 %v1095_v24 }
 0x950   : > { %v2576_v26 = vpop.eup %2575 }
 0x951   : > { %v997_v27 = vmul.f32 %v2576_v26, %v2754_v25 }
 0x953   : > { %v998_v28 = vadd.f32 %v997_v27, %v2760_v35 }
 0x954   : > { %v2578_v29 = vpop.eup %2577 }
 0x955   : > { %1001 = vrot.lane.b32.xlu0 %v998_v28, %s2629_s28  ;;  %v1097_v30 = vmul.f32 %v2578_v29, %v2754_v25  ;;  %v999_v37 = vmul.f32 %v998_v28, %v797_v61 }
 0x957   : > { %v1098_v31 = vadd.f32 %v1097_v30, %v2760_v35 }
 0x959   : > { %1101 = vrot.lane.b32.xlu1 %v1098_v31, %s2629_s28  ;;  %v1099_v40 = vmul.f32 %v1098_v31, %v897_v0 }
 0x9c7   : > { %v1002_v32 = vpop.permute.xlu0 %1001 }
 0x9c8   : > { %v1004_v33 = vmul.f32 %v1002_v32, %v998_v28  ;;  %v2155_v32 = vld [vmem:[%s2672_s27 + $0x4] sm:$0x3] }
 0x9ca   : > { %1006 = vrot.lane.b32.xlu0 %v1004_v33, %s2627_s26 }
 0x9cb   : > { %v1102_v34 = vpop.permute.xlu1 %1101 }
 0x9cc   : > { %v1104_v36 = vmul.f32 %v1102_v34, %v1098_v31 }
 0x9ce   : > { %1106 = vrot.lane.b32.xlu1 %v1104_v36, %s2627_s26 }
 0xa3c   : > { %v1007_v38 = vpop.permute.xlu0 %1006 }
 0xa3d   : > { %v1009_v39 = vadd.f32 %v1007_v38, %v999_v37 }
 0xa3f   : > { %2579 = vtanh.f32 %v1009_v39 }
 0xa40   : > { %v1107_v41 = vpop.permute.xlu1 %1106 }
 0xa41   : > { %v1109_v42 = vadd.f32 %v1107_v41, %v1099_v40 }
 0xa43   : > { %2581 = vtanh.f32 %v1109_v42 }
 0xa49   : > { %v2580_v43 = vpop.eup %2579 }
 0xa4a   : > { %1012 = vrot.lane.b32.xlu0 %v2580_v43, %s2629_s28 }
 0xa4d   : > { %v2582_v44 = vpop.eup %2581 }
 0xa4e   : > { %1112 = vrot.lane.b32.xlu1 %v2582_v44, %s2629_s28 }
 0xabc   : > { %v1013_v45 = vpop.permute.xlu0 %1012 }
 0xabd   : > { %v1015_v46 = vmul.f32 %v1013_v45, %v998_v28  ;;  %v2153_v28 = vld [vmem:[%s2667_s23 + $0xa] sm:$0x3] }
 0xabf   : > { %1117 = vrot.lane.b32.xlu0 %v1015_v46, %s2627_s26 }
 0xac0   : > { %v1113_v47 = vpop.permute.xlu1 %1112 }
 0xac1   : > { %v1115_v48 = vmul.f32 %v1113_v47, %v1098_v31 }
 0xac3   : > { %1123 = vrot.lane.b32.xlu1 %v1115_v48, %s2627_s26 }
 0xb31   : > { %v1118_v49 = vpop.permute.xlu0 %1117 }
 0xb32   : > { %2141 = vst.msk [vmem:[%s2677_s30 + $0x6] sm:$0x3] %vm484_vm6, %v1118_v49  ;;  %2360 = vmatmul.mubr.msk.f32.vlgmr.msra.gmra.mrb[8].mxu0 %vm274_vm2, %v1118_v49 }
 0xb33   : > { %2501 = vmatpush3.bf16.msra.mxu0 %v2694_v5  ;;  %2381 = vmatprep.mubr.msk.f32.mxu0 %vm2625_vm1, %v2626_v10 }
 0xb34   : > { %2502 = vmatprep.subr.bf16.mxu0 %v2624_v4 }
 0xb35   : > { %v1124_v50 = vpop.permute.xlu1 %1123 }
 0xb36   : > { %2142 = vst.msk [vmem:[%s2682_s7 + $0x8] sm:$0x3] %vm484_vm6, %v1124_v50  ;;  %2371 = vmatmul.mubr.msk.f32.vlgmr.msra.gmra.mrb[8].mxu1 %vm274_vm2, %v1124_v50 }
 0xb37   : > { %2504 = vmatpush3.bf16.msra.mxu0 %v2719_v13  ;;  %2507 = vmatpush3.bf16.msra.mxu1 %v2706_v9 }
 0xb38   : > { %2508 = vmatprep.subr.bf16.mxu1 %v2624_v4  ;;  %2392 = vmatprep.mubr.msk.f32.mxu1 %vm2625_vm1, %v2626_v10 }
 0xb39   : > { %2511 = vmatprep.subr.bf16.mxu0 %v2624_v4 }
 0xb3b   : > { %2510 = vmatpush3.bf16.msra.mxu1 %v2723_v15 }
 0xb3c   : > { %2517 = vmatprep.subr.bf16.mxu1 %v2624_v4 }
 0xc05   : > { %v1202_v52 = vpop.f32.mrb[8].mxu0 }
 0xc06   : > { %v1206_v53 = vadd.f32 %v2143_v51, %v1202_v52  ;;  %v2361_v54 = vpop.f32.mrb[9].mxu0 }
 0xc08   : > { %v1207_v56 = vmul.f32 %v1206_v53, %v2754_v25 }
 0xc09   : > { %v1302_v57 = vpop.f32.mrb[8].mxu1 }
 0xc0a   : > { %2583 = vtanh.f32 %v1207_v56  ;;  %v1306_v58 = vadd.f32 %v2145_v55, %v1302_v57  ;;  %v2372_v59 = vpop.f32.mrb[9].mxu1 }
 0xc0c   : > { %v1307_v60 = vmul.f32 %v1306_v58, %v2754_v25 }
 0xc0e   : > { %2585 = vtanh.f32 %v1307_v60 }
 0xc14   : > { %v2584_v61 = vpop.eup %2583 }
 0xc15   : > { %v1209_v62 = vmul.f32 %v2584_v61, %v2754_v25 }
 0xc17   : > { %v1210_v63 = vadd.f32 %v1209_v62, %v2760_v35 }
 0xc18   : > { %v2586_v0 = vpop.eup %2585 }
 0xc19   : > { %1213 = vrot.lane.b32.xlu0 %v1210_v63, %s2629_s28  ;;  %v1309_v1 = vmul.f32 %v2586_v0, %v2754_v25  ;;  %v1211_v11 = vmul.f32 %v1210_v63, %v1009_v39 }
 0xc1b   : > { %v1310_v2 = vadd.f32 %v1309_v1, %v2760_v35 }
 0xc1d   : > { %1313 = vrot.lane.b32.xlu1 %v1310_v2, %s2629_s28  ;;  %v1311_v16 = vmul.f32 %v1310_v2, %v1109_v42 }
 0xc8b   : > { %v1214_v3 = vpop.permute.xlu0 %1213 }
 0xc8c   : > { %v1216_v6 = vmul.f32 %v1214_v3, %v1210_v63 }
 0xc8e   : > { %1218 = vrot.lane.b32.xlu0 %v1216_v6, %s2627_s26 }
 0xc8f   : > { %v1314_v7 = vpop.permute.xlu1 %1313 }
 0xc90   : > { %v1316_v8 = vmul.f32 %v1314_v7, %v1310_v2 }
 0xc92   : > { %1318 = vrot.lane.b32.xlu1 %v1316_v8, %s2627_s26 }
 0xd00   : > { %v1219_v12 = vpop.permute.xlu0 %1218 }
 0xd01   : > { %v1221_v14 = vadd.f32 %v1219_v12, %v1211_v11 }
 0xd03   : > { %2587 = vtanh.f32 %v1221_v14 }
 0xd04   : > { %v1319_v17 = vpop.permute.xlu1 %1318 }
 0xd05   : > { %v1321_v18 = vadd.f32 %v1319_v17, %v1311_v16 }
 0xd07   : > { %2589 = vtanh.f32 %v1321_v18 }
 0xd0d   : > { %v2588_v19 = vpop.eup %2587 }
 0xd0e   : > { %1224 = vrot.lane.b32.xlu0 %v2588_v19, %s2629_s28 }
 0xd11   : > { %v2590_v20 = vpop.eup %2589 }
 0xd12   : > { %1324 = vrot.lane.b32.xlu1 %v2590_v20, %s2629_s28 }
 0xd80   : > { %v1225_v21 = vpop.permute.xlu0 %1224 }
 0xd81   : > { %v1227_v22 = vmul.f32 %v1225_v21, %v1210_v63 }
 0xd83   : > { %1329 = vrot.lane.b32.xlu0 %v1227_v22, %s2627_s26 }
 0xd84   : > { %v1325_v23 = vpop.permute.xlu1 %1324 }
 0xd85   : > { %v1327_v24 = vmul.f32 %v1325_v23, %v1310_v2  ;;  %v2165_v2 = vld [vmem:[%s2672_s27 + $0x2] sm:$0x3] }
 0xd87   : > { %1335 = vrot.lane.b32.xlu1 %v1327_v24, %s2627_s26 }
 0xdf5   : > { %v1330_v26 = vpop.permute.xlu0 %1329 }
 0xdf6   : > { %2151 = vst.msk [vmem:[%s2677_s30 + $0x8] sm:$0x3] %vm484_vm6, %v1330_v26  ;;  %2382 = vmatmul.mubr.msk.f32.vlgmr.msra.gmra.mrb[10].mxu0 %vm274_vm2, %v1330_v26 }
 0xdf7   : > { %2513 = vmatpush3.bf16.msra.mxu0 %v2694_v5  ;;  %2403 = vmatprep.mubr.msk.f32.mxu0 %vm2625_vm1, %v2626_v10 }
 0xdf8   : > { %2514 = vmatprep.subr.bf16.mxu0 %v2624_v4 }
 0xdf9   : > { %v1336_v27 = vpop.permute.xlu1 %1335 }
 0xdfa   : > { %2152 = vst.msk [vmem:[%s2682_s7 + $0x6] sm:$0x3] %vm484_vm6, %v1336_v27  ;;  %2393 = vmatmul.mubr.msk.f32.vlgmr.msra.gmra.mrb[10].mxu1 %vm274_vm2, %v1336_v27 }
 0xdfb   : > { %2516 = vmatpush3.bf16.msra.mxu0 %v2719_v13  ;;  %2519 = vmatpush3.bf16.msra.mxu1 %v2706_v9 }
 0xdfc   : > { %2520 = vmatprep.subr.bf16.mxu1 %v2624_v4  ;;  %2414 = vmatprep.mubr.msk.f32.mxu1 %vm2625_vm1, %v2626_v10 }
 0xdfd   : > { %2523 = vmatprep.subr.bf16.mxu0 %v2624_v4 }
 0xdff   : > { %2522 = vmatpush3.bf16.msra.mxu1 %v2723_v15 }
 0xe00   : > { %2529 = vmatprep.subr.bf16.mxu1 %v2624_v4 }
 0xec9   : > { %v1414_v29 = vpop.f32.mrb[10].mxu0 }
 0xeca   : > { %v1418_v30 = vadd.f32 %v2153_v28, %v1414_v29  ;;  %v2383_v31 = vpop.f32.mrb[11].mxu0 }
 0xecc   : > { %v1419_v33 = vmul.f32 %v1418_v30, %v2754_v25 }
 0xecd   : > { %v1514_v34 = vpop.f32.mrb[10].mxu1 }
 0xece   : > { %2591 = vtanh.f32 %v1419_v33  ;;  %v1518_v36 = vadd.f32 %v2155_v32, %v1514_v34  ;;  %v2394_v37 = vpop.f32.mrb[11].mxu1  ;;  %v2173_v34 = vld [vmem:[%s2667_s23 + $0xe] sm:$0x3] }
 0xed0   : > { %v1519_v38 = vmul.f32 %v1518_v36, %v2754_v25 }
 0xed2   : > { %2593 = vtanh.f32 %v1519_v38 }
 0xed8   : > { %v2592_v39 = vpop.eup %2591 }
 0xed9   : > { %v1421_v40 = vmul.f32 %v2592_v39, %v2754_v25  ;;  %v1864_v39 = vld [vmem:[%s2672_s27] sm:$0x3] }
 0xedb   : > { %v1422_v41 = vadd.f32 %v1421_v40, %v2760_v35 }
 0xedc   : > { %v2594_v42 = vpop.eup %2593 }
 0xedd   : > { %1425 = vrot.lane.b32.xlu0 %v1422_v41, %s2629_s28  ;;  %v1521_v43 = vmul.f32 %v2594_v42, %v2754_v25  ;;  %v1423_v49 = vmul.f32 %v1422_v41, %v1221_v14 }
 0xedf   : > { %v1522_v44 = vadd.f32 %v1521_v43, %v2760_v35 }
 0xee1   : > { %1525 = vrot.lane.b32.xlu1 %v1522_v44, %s2629_s28  ;;  %v1523_v52 = vmul.f32 %v1522_v44, %v1321_v18 }
 0xf4f   : > { %v1426_v45 = vpop.permute.xlu0 %1425 }
 0xf50   : > { %v1428_v46 = vmul.f32 %v1426_v45, %v1422_v41 }
 0xf52   : > { %1430 = vrot.lane.b32.xlu0 %v1428_v46, %s2627_s26 }
 0xf53   : > { %v1526_v47 = vpop.permute.xlu1 %1525 }
 0xf54   : > { %v1528_v48 = vmul.f32 %v1526_v47, %v1522_v44 }
 0xf56   : > { %1530 = vrot.lane.b32.xlu1 %v1528_v48, %s2627_s26 }
 0xfc4   : > { %v1431_v50 = vpop.permute.xlu0 %1430 }
 0xfc5   : > { %v1433_v51 = vadd.f32 %v1431_v50, %v1423_v49 }
 0xfc7   : > { %2595 = vtanh.f32 %v1433_v51 }
 0xfc8   : > { %v1531_v53 = vpop.permute.xlu1 %1530 }
 0xfc9   : > { %v1533_v54 = vadd.f32 %v1531_v53, %v1523_v52 }
 0xfcb   : > { %2597 = vtanh.f32 %v1533_v54 }
 0xfd1   : > { %v2596_v55 = vpop.eup %2595 }
 0xfd2   : > { %1436 = vrot.lane.b32.xlu0 %v2596_v55, %s2629_s28 }
 0xfd5   : > { %v2598_v56 = vpop.eup %2597 }
 0xfd6   : > { %1536 = vrot.lane.b32.xlu1 %v2598_v56, %s2629_s28 }
0x1044   : > { %v1437_v57 = vpop.permute.xlu0 %1436 }
0x1045   : > { %v1439_v58 = vmul.f32 %v1437_v57, %v1422_v41 }
0x1047   : > { %1541 = vrot.lane.b32.xlu0 %v1439_v58, %s2627_s26 }
0x1048   : > { %v1537_v59 = vpop.permute.xlu1 %1536 }
0x1049   : > { %v1539_v60 = vmul.f32 %v1537_v59, %v1522_v44 }
0x104b   : > { %1547 = vrot.lane.b32.xlu1 %v1539_v60, %s2627_s26 }
0x10b9   : > { %v1542_v61 = vpop.permute.xlu0 %1541 }
0x10ba   : > { %2161 = vst.msk [vmem:[%s2677_s30 + $0xa] sm:$0x3] %vm484_vm6, %v1542_v61  ;;  %2404 = vmatmul.mubr.msk.f32.vlgmr.msra.gmra.mrb[12].mxu0 %vm274_vm2, %v1542_v61 }
0x10bb   : > { %2525 = vmatpush3.bf16.msra.mxu0 %v2694_v5  ;;  %2425 = vmatprep.mubr.msk.f32.mxu0 %vm2625_vm1, %v2626_v10  ;;  %v2163_v5 = vld [vmem:[%s2667_s23 + $0xc] sm:$0x3]  ;;  %s2630_s23 = smov 96  }
0x10bc   : > { %2526 = vmatprep.subr.bf16.mxu0 %v2624_v4 }
0x10bd   : > { %v1548_v62 = vpop.permute.xlu1 %1547 }
0x10be   : > { %2162 = vst.msk [vmem:[%s2682_s7 + $0x4] sm:$0x3] %vm484_vm6, %v1548_v62  ;;  %2415 = vmatmul.mubr.msk.f32.vlgmr.msra.gmra.mrb[12].mxu1 %vm274_vm2, %v1548_v62 }
0x10bf   : > { %2528 = vmatpush3.bf16.msra.mxu0 %v2719_v13  ;;  %2531 = vmatpush3.bf16.msra.mxu1 %v2706_v9 }
0x10c0   : > { %2532 = vmatprep.subr.bf16.mxu1 %v2624_v4  ;;  %2436 = vmatprep.mubr.msk.f32.mxu1 %vm2625_vm1, %v2626_v10 }
0x10c3   : > { %2534 = vmatpush3.bf16.msra.mxu1 %v2723_v15 }
0x118d   : > { %v1626_v63 = vpop.f32.mrb[12].mxu0 }
0x118e   : > { %v1630_v0 = vadd.f32 %v2163_v5, %v1626_v63  ;;  %v2405_v1 = vpop.f32.mrb[13].mxu0 }
0x1190   : > { %v1631_v3 = vmul.f32 %v1630_v0, %v2754_v25 }
0x1191   : > { %v1726_v6 = vpop.f32.mrb[12].mxu1 }
0x1192   : > { %2599 = vtanh.f32 %v1631_v3  ;;  %v1730_v7 = vadd.f32 %v2165_v2, %v1726_v6  ;;  %v2416_v13 = vpop.f32.mrb[13].mxu1 }
0x1194   : > { %v1731_v9 = vmul.f32 %v1730_v7, %v2754_v25 }
0x1196   : > { %2601 = vtanh.f32 %v1731_v9 }
0x119c   : > { %v2600_v4 = vpop.eup %2599 }
0x119d   : > { %v1633_v8 = vmul.f32 %v2600_v4, %v2754_v25 }
0x119f   : > { %v1634_v10 = vadd.f32 %v1633_v8, %v2760_v35 }
0x11a0   : > { %v2602_v15 = vpop.eup %2601 }
0x11a1   : > { %1637 = vrot.lane.b32.xlu0 %v1634_v10, %s2629_s28  ;;  %v1733_v11 = vmul.f32 %v2602_v15, %v2754_v25  ;;  %v1635_v19 = vmul.f32 %v1634_v10, %v1433_v51 }
0x11a3   : > { %v1734_v12 = vadd.f32 %v1733_v11, %v2760_v35 }
0x11a5   : > { %1737 = vrot.lane.b32.xlu1 %v1734_v12, %s2629_s28  ;;  %v1735_v22 = vmul.f32 %v1734_v12, %v1533_v54 }
0x1213   : > { %v1638_v14 = vpop.permute.xlu0 %1637 }
0x1214   : > { %v1640_v16 = vmul.f32 %v1638_v14, %v1634_v10 }
0x1216   : > { %1642 = vrot.lane.b32.xlu0 %v1640_v16, %s2627_s26 }
0x1217   : > { %v1738_v17 = vpop.permute.xlu1 %1737 }
0x1218   : > { %v1740_v18 = vmul.f32 %v1738_v17, %v1734_v12 }
0x121a   : > { %1742 = vrot.lane.b32.xlu1 %v1740_v18, %s2627_s26 }
0x1288   : > { %v1643_v20 = vpop.permute.xlu0 %1642 }
0x1289   : > { %v1645_v21 = vadd.f32 %v1643_v20, %v1635_v19 }
0x128b   : > { %2603 = vtanh.f32 %v1645_v21 }
0x128c   : > { %v1743_v23 = vpop.permute.xlu1 %1742 }
0x128d   : > { %v1745_v24 = vadd.f32 %v1743_v23, %v1735_v22 }
0x128f   : > { %2605 = vtanh.f32 %v1745_v24 }
0x1295   : > { %v2604_v26 = vpop.eup %2603 }
0x1296   : > { %1648 = vrot.lane.b32.xlu0 %v2604_v26, %s2629_s28 }
0x1299   : > { %v2606_v27 = vpop.eup %2605 }
0x129a   : > { %1748 = vrot.lane.b32.xlu1 %v2606_v27, %s2629_s28 }
0x1308   : > { %v1649_v28 = vpop.permute.xlu0 %1648 }
0x1309   : > { %v1651_v29 = vmul.f32 %v1649_v28, %v1634_v10 }
0x130b   : > { %1753 = vrot.lane.b32.xlu0 %v1651_v29, %s2627_s26 }
0x130c   : > { %v1749_v30 = vpop.permute.xlu1 %1748 }
0x130d   : > { %v1751_v31 = vmul.f32 %v1749_v30, %v1734_v12 }
0x130f   : > { %1759 = vrot.lane.b32.xlu1 %v1751_v31, %s2627_s26 }
0x137d   : > { %v1754_v32 = vpop.permute.xlu0 %1753 }
0x137e   : > { %2171 = vst.msk [vmem:[%s2677_s30 + $0xc] sm:$0x3] %vm484_vm6, %v1754_v32  ;;  %2426 = vmatmul.mubr.msk.f32.vlgmr.msra.gmra.mrb[14].mxu0 %vm274_vm2, %v1754_v32 }
0x1381   : > { %v1760_v33 = vpop.permute.xlu1 %1759 }
0x1382   : > { %2172 = vst.msk [vmem:[%s2682_s7 + $0x2] sm:$0x3] %vm484_vm6, %v1760_v33  ;;  %2437 = vmatmul.mubr.msk.f32.vlgmr.msra.gmra.mrb[14].mxu1 %vm274_vm2, %v1760_v33 }
0x1451   : > { %v1838_v36 = vpop.f32.mrb[14].mxu0 }
0x1452   : > { %v1842_v37 = vadd.f32 %v2173_v34, %v1838_v36  ;;  %v2427_v38 = vpop.f32.mrb[15].mxu0 }
0x1454   : > { %v1843_v40 = vmul.f32 %v1842_v37, %v2754_v25 }
0x1455   : > { %v1937_v41 = vpop.f32.mrb[14].mxu1 }
0x1456   : > { %2607 = vtanh.f32 %v1843_v40  ;;  %v1941_v42 = vadd.f32 %v1937_v41, %v1864_v39  ;;  %v2438_v43 = vpop.f32.mrb[15].mxu1 }
0x1458   : > { %v1942_v44 = vmul.f32 %v1941_v42, %v2754_v25 }
0x145a   : > { %2609 = vtanh.f32 %v1942_v44 }
0x1460   : > { %v2608_v45 = vpop.eup %2607 }
0x1461   : > { %v1845_v46 = vmul.f32 %v2608_v45, %v2754_v25 }
0x1463   : > { %v1846_v47 = vadd.f32 %v1845_v46, %v2760_v35 }
0x1464   : > { %v2610_v48 = vpop.eup %2609 }
0x1465   : > { %1849 = vrot.lane.b32.xlu0 %v1846_v47, %s2629_s28  ;;  %v1944_v49 = vmul.f32 %v2610_v48, %v2754_v25  ;;  %v1847_v55 = vmul.f32 %v1846_v47, %v1645_v21 }
0x1467   : > { %v1945_v50 = vadd.f32 %v1944_v49, %v2760_v35 }
0x1469   : > { %1948 = vrot.lane.b32.xlu1 %v1945_v50, %s2629_s28  ;;  %v1946_v58 = vmul.f32 %v1945_v50, %v1745_v24 }
0x14d7   : > { %v1850_v51 = vpop.permute.xlu0 %1849 }
0x14d8   : > { %v1852_v52 = vmul.f32 %v1850_v51, %v1846_v47 }
0x14da   : > { %1854 = vrot.lane.b32.xlu0 %v1852_v52, %s2627_s26 }
0x14db   : > { %v1949_v53 = vpop.permute.xlu1 %1948 }
0x14dc   : > { %v1951_v54 = vmul.f32 %v1949_v53, %v1945_v50 }
0x14de   : > { %1953 = vrot.lane.b32.xlu1 %v1951_v54, %s2627_s26 }
0x154c   : > { %v1855_v56 = vpop.permute.xlu0 %1854 }
0x154d   : > { %v1857_v57 = vadd.f32 %v1855_v56, %v1847_v55 }
0x154f   : > { %2611 = vtanh.f32 %v1857_v57 }
0x1550   : > { %v1954_v59 = vpop.permute.xlu1 %1953 }
0x1551   : > { %v1956_v60 = vadd.f32 %v1954_v59, %v1946_v58 }
0x1553   : > { %2613 = vtanh.f32 %v1956_v60 }
0x1559   : > { %v2612_v25 = vpop.eup %2611 }
0x155a   : > { %1860 = vrot.lane.b32.xlu0 %v2612_v25, %s2629_s28 }
0x155d   : > { %v2614_v35 = vpop.eup %2613 }
0x155e   : > { %1959 = vrot.lane.b32.xlu1 %v2614_v35, %s2629_s28 }
0x15cc   : > { %v1861_v61 = vpop.permute.xlu0 %1860 }
0x15cd   : > { %v1863_v62 = vmul.f32 %v1861_v61, %v1846_v47 }
0x15cf   : > { %1964 = vrot.lane.b32.xlu0 %v1863_v62, %s2627_s26 }
0x15d0   : > { %v1960_v5 = vpop.permute.xlu1 %1959 }
0x15d1   : > { %v1962_v63 = vmul.f32 %v1960_v5, %v1945_v50 }
0x15d3   : > { %1970 = vrot.lane.b32.xlu1 %v1962_v63, %s2627_s26  ;;  %1976 = vrot.lane.b32.xlu0 %v1857_v57, %s2630_s23 }
0x15d7   : > { %1982 = vrot.lane.b32.xlu1 %v1956_v60, %s2630_s23 }
0x1641   : > { %v1965_v0 = vpop.permute.xlu0 %1964 }
0x1642   : > { %2180 = vst.msk [vmem:[%s2677_s30 + $0xe] sm:$0x3] %vm484_vm6, %v1965_v0  ;;  %1974 = vst.msk [vmem:[#allocation2] sm:$0x3] %vm484_vm6, %v1965_v0 }
0x1645   : > { %v1971_v1 = vpop.permute.xlu1 %1970  ;;  %v1977_v2 = vpop.permute.xlu0 %1976 }
0x1646   : > { %1973 = vst.msk [vmem:[%s2682_s7] sm:$0x3] %vm484_vm6, %v1971_v1  ;;  %1980 = vst.msk [vmem:[#allocation4] sm:$0x3] %vm484_vm6, %v1971_v1 }
0x1647   : > { %1979 = vst.msk [vmem:[#allocation3] sm:$0x3] %vm484_vm6, %v1977_v2 }
0x1649   : > { %v1983_v3 = vpop.permute.xlu1 %1982 }
0x164a   : > { %1985 = vst.msk [vmem:[#allocation5] sm:$0x3] %vm484_vm6, %v1983_v3 }
0x164b PF: > { %s15_s15 = sadd.s32 1, %s2621_s15  }
0x164c   : > { %p12_p6 = scmp.ge.s32.totalorder %s15_s15, 4  }
0x164e   :  { %14 = sbr.rel (!%p12_p6) target bundleno = 1 (0x1), region = 110 }

</bundles_post_ra>
